<compile_context>
chip_gen: v6e
topology: v6e:2x2x1
jax: 0.10.0
libtpu: 0.0.40
codegen_flags: <defaults>
</compile_context>

<pallas_src>
import jax
import jax.numpy as jnp
from jax import lax
from jax.experimental import pallas as pl
from jax.experimental.pallas import tpu as pltpu  # noqa: F401  (TPU backend)

# ---- model hyper-params (consistent with the module __init__) ----
NHEAD = 4
D_MODEL = 32
D_FFN = 64
HEAD_DIM = D_MODEL // NHEAD        # 8
HD_PAD = 32                        # head_dim zero-padded to 32 lanes
EPS = 1e-6                         # LayerNorm(d_model, eps=1e-06)

B, L = 2, 8                        # batch, sequence length
BL = B * L

# ---- f32 vector-slab row layout (lane width 64 to also hold b1) ----
ROW_BQ = 0                         # rows 0..3  : per-head q bias (scale folded)
ROW_BK = NHEAD                     # rows 4..7  : per-head k bias
ROW_BV = 2 * NHEAD                 # rows 8..11 : per-head v bias
ROW_BO = 12                        # out-proj bias
ROW_B1 = 13                        # FFN bias 1 (width 64)
ROW_B2 = 14                        # FFN bias 2
ROW_G1 = 15                        # norm1 gamma
ROW_BT1 = 16                       # norm1 beta
ROW_G2 = 17                        # norm2 gamma
ROW_BT2 = 18                       # norm2 beta
N_VEC_ROWS = 24                    # padded to a sublane multiple
VEC_W = 64


# ---------------- in-kernel helpers ----------------
def _layer_norm(x, g, b):
    mean = jnp.mean(x, axis=-1, keepdims=True)
    var = jnp.mean(jnp.square(x - mean), axis=-1, keepdims=True)
    return (x - mean) * lax.rsqrt(var + EPS) * g + b


# ---------------- fused encoder-layer kernel (grid-less, single TC) ------------
def encoder_layer_kernel(x_ref, w_heads_ref, w_ffn_ref, vec_ref, out_ref, attn_ref):
    x = x_ref[...]                                   # (B, L, D) f32
    xf = x.reshape(BL, D_MODEL)                      # (16, 32)  (no relayout)
    x_bf = xf.astype(jnp.bfloat16)

    vec = vec_ref[...]                               # (24, 64) f32

    attn_sum = jnp.zeros((B, L, L), jnp.float32)
    attn_out = jnp.zeros((BL, D_MODEL), jnp.float32)

    # Static unrolled head loop.  Only major-dim weight-slab indexing; no
    # activation lane slices, no lane concat.  head_dim is zero-padded to 32,
    # so the padded lanes contribute exactly zero to every contraction.
    for h in range(NHEAD):
        wq = w_heads_ref[h]                          # (32, 32) bf16, scale folded
        wk = w_heads_ref[NHEAD + h]
        wv = w_heads_ref[2 * NHEAD + h]
        wo = w_heads_ref[3 * NHEAD + h]              # (32, 32) bf16, rows >=8 zero

        q = jnp.dot(x_bf, wq, preferred_element_type=jnp.float32)
        k = jnp.dot(x_bf, wk, preferred_element_type=jnp.float32)
        v = jnp.dot(x_bf, wv, preferred_element_type=jnp.float32)
        q = q + vec[ROW_BQ + h:ROW_BQ + h + 1, :HD_PAD]   # padded lanes stay 0
        k = k + vec[ROW_BK + h:ROW_BK + h + 1, :HD_PAD]
        v = v + vec[ROW_BV + h:ROW_BV + h + 1, :HD_PAD]

        qb = q.reshape(B, L, HD_PAD).astype(jnp.bfloat16)
        kb = k.reshape(B, L, HD_PAD).astype(jnp.bfloat16)
        vb = v.reshape(B, L, HD_PAD).astype(jnp.bfloat16)

        s = jnp.einsum('bqd,bkd->bqk', qb, kb,
                       preferred_element_type=jnp.float32)        # (B, L, L)
        s = s - jnp.max(s, axis=-1, keepdims=True)                # keep stable softmax
        p = jnp.exp(s)
        p = p * pl.reciprocal(jnp.sum(p, axis=-1, keepdims=True), approx=False)
        attn_sum = attn_sum + p

        ctx = jnp.einsum('bqk,bkd->bqd', p.astype(jnp.bfloat16), vb,
                         preferred_element_type=jnp.float32)      # (B, L, 32)
        # per-head output projection accumulated directly (deletes the concat)
        attn_out = attn_out + jnp.dot(
            ctx.reshape(BL, HD_PAD).astype(jnp.bfloat16), wo,
            preferred_element_type=jnp.float32)

    attn_out = attn_out + vec[ROW_BO:ROW_BO + 1, :D_MODEL]

    # --- residual + post-norm 1 (f32 elementwise) ---
    x1 = _layer_norm(xf + attn_out,
                     vec[ROW_G1:ROW_G1 + 1, :D_MODEL],
                     vec[ROW_BT1:ROW_BT1 + 1, :D_MODEL])

    # --- positionwise feed forward + residual + post-norm 2 ---
    w1 = w_ffn_ref[0:D_MODEL, :]                     # (32, 64) bf16
    w2t = w_ffn_ref[D_MODEL:2 * D_MODEL, :]          # (32, 64) bf16  (= W2^T)
    h1 = jnp.maximum(
        jnp.dot(x1.astype(jnp.bfloat16), w1, preferred_element_type=jnp.float32)
        + vec[ROW_B1:ROW_B1 + 1, :D_FFN], 0.0)
    ff = lax.dot_general(h1.astype(jnp.bfloat16), w2t,
                         dimension_numbers=(((1,), (1,)), ((), ())),
                         preferred_element_type=jnp.float32)      # h1 @ W2
    ff = ff + vec[ROW_B2:ROW_B2 + 1, :D_MODEL]
    x2 = _layer_norm(x1 + ff,
                     vec[ROW_G2:ROW_G2 + 1, :D_MODEL],
                     vec[ROW_BT2:ROW_BT2 + 1, :D_MODEL])

    out_ref[...] = x2.reshape(B, L, D_MODEL)
    # NOTE: (B, L, L=8) is a narrow-lane store (vst.msk); kept because the
    # module returns the head-averaged attention map directly.
    attn_ref[...] = attn_sum * (1.0 / NHEAD)


def transformer_encoder_layer(src, w_heads, w_ffn, vecs):
    """Single fused, grid-less pallas_call: whole working set (<100 KB) in VMEM."""
    return pl.pallas_call(
        encoder_layer_kernel,
        out_shape=(jax.ShapeDtypeStruct((B, L, D_MODEL), jnp.float32),
                   jax.ShapeDtypeStruct((B, L, L), jnp.float32)),
    )(src, w_heads, w_ffn, vecs)


# ---------------- deterministic parameter init (f32 master copies) -------------
def init_params(key):
    ks = jax.random.split(key, 12)
    nrm = lambda k, shp, s=0.05: (s * jax.random.normal(k, shp)).astype(jnp.float32)
    p = {
        "w_q": nrm(ks[0], (D_MODEL, D_MODEL)),
        "w_k": nrm(ks[1], (D_MODEL, D_MODEL)),
        "w_v": nrm(ks[2], (D_MODEL, D_MODEL)),
        "b_q": nrm(ks[3], (D_MODEL,), 0.01),
        "b_k": nrm(ks[4], (D_MODEL,), 0.01),
        "b_v": nrm(ks[5], (D_MODEL,), 0.01),
        "w_o": nrm(ks[6], (D_MODEL, D_MODEL)),
        "b_o": nrm(ks[7], (D_MODEL,), 0.01),
        "w1": nrm(ks[8], (D_MODEL, D_FFN)),
        "b1": nrm(ks[9], (D_FFN,), 0.01),
        "w2": nrm(ks[10], (D_FFN, D_MODEL)),
        "b2": nrm(ks[11], (D_MODEL,), 0.01),
        "g1": jnp.ones((D_MODEL,), jnp.float32),
        "bt1": jnp.zeros((D_MODEL,), jnp.float32),
        "g2": jnp.ones((D_MODEL,), jnp.float32),
        "bt2": jnp.zeros((D_MODEL,), jnp.float32),
    }
    return p


def pack_params(p):
    """One-time wrapper-side re-layout: per-head bf16 weight slab (scale folded,
    head_dim zero-padded to 32), bf16 FFN slab [W1 ; W2^T], f32 vector slab."""
    scale = 1.0 / (HEAD_DIM ** 0.5)

    blocks = []
    for w, s in ((p["w_q"], scale), (p["w_k"], 1.0), (p["w_v"], 1.0)):
        for h in range(NHEAD):
            blk = jnp.zeros((D_MODEL, HD_PAD), jnp.float32)
            blk = blk.at[:, :HEAD_DIM].set(s * w[:, h * HEAD_DIM:(h + 1) * HEAD_DIM])
            blocks.append(blk)
    for h in range(NHEAD):
        blk = jnp.zeros((HD_PAD, D_MODEL), jnp.float32)
        blk = blk.at[:HEAD_DIM, :].set(p["w_o"][h * HEAD_DIM:(h + 1) * HEAD_DIM, :])
        blocks.append(blk)
    w_heads = jnp.stack(blocks, axis=0).astype(jnp.bfloat16)      # (16, 32, 32)

    w_ffn = jnp.concatenate([p["w1"], p["w2"].T], axis=0).astype(jnp.bfloat16)  # (64, 64)

    vecs = jnp.zeros((N_VEC_ROWS, VEC_W), jnp.float32)
    for h in range(NHEAD):
        sl = slice(h * HEAD_DIM, (h + 1) * HEAD_DIM)
        vecs = vecs.at[ROW_BQ + h, :HEAD_DIM].set(scale * p["b_q"][sl])
        vecs = vecs.at[ROW_BK + h, :HEAD_DIM].set(p["b_k"][sl])
        vecs = vecs.at[ROW_BV + h, :HEAD_DIM].set(p["b_v"][sl])
    vecs = vecs.at[ROW_BO, :D_MODEL].set(p["b_o"])
    vecs = vecs.at[ROW_B1, :D_FFN].set(p["b1"])
    vecs = vecs.at[ROW_B2, :D_MODEL].set(p["b2"])
    vecs = vecs.at[ROW_G1, :D_MODEL].set(p["g1"])
    vecs = vecs.at[ROW_BT1, :D_MODEL].set(p["bt1"])
    vecs = vecs.at[ROW_G2, :D_MODEL].set(p["g2"])
    vecs = vecs.at[ROW_BT2, :D_MODEL].set(p["bt2"])
    return w_heads, w_ffn, vecs


# ---------------- pure-JAX f32 reference (module semantics) ----------------
def reference_forward(src, p):
    def ln(x, g, b):
        m = x.mean(-1, keepdims=True)
        v = ((x - m) ** 2).mean(-1, keepdims=True)
        return (x - m) / jnp.sqrt(v + EPS) * g + b

    xf = src.reshape(BL, D_MODEL)
    q = (xf @ p["w_q"] + p["b_q"]).reshape(B, L, NHEAD, HEAD_DIM)
    k = (xf @ p["w_k"] + p["b_k"]).reshape(B, L, NHEAD, HEAD_DIM)
    v = (xf @ p["w_v"] + p["b_v"]).reshape(B, L, NHEAD, HEAD_DIM)
    s = jnp.einsum('blhd,bshd->bhls', q, k) / (HEAD_DIM ** 0.5)
    pw = jax.nn.softmax(s, axis=-1)
    attn = jnp.mean(pw, axis=1)
    o = jnp.einsum('bhls,bshd->blhd', pw, v).reshape(BL, D_MODEL)
    x1 = ln(xf + (o @ p["w_o"] + p["b_o"]), p["g1"], p["bt1"])
    ff = jnp.maximum(x1 @ p["w1"] + p["b1"], 0.0) @ p["w2"] + p["b2"]
    x2 = ln(x1 + ff, p["g2"], p["bt2"])
    return x2.reshape(B, L, D_MODEL), attn


if __name__ == "__main__":
    key = jax.random.PRNGKey(0)
    k_src, k_par = jax.random.split(key)

    src = jax.random.normal(k_src, (B, L, D_MODEL), jnp.float32)
    raw = init_params(k_par)
    w_heads, w_ffn, vecs = pack_params(raw)

    fwd = jax.jit(transformer_encoder_layer)
    out, self_attn = fwd(src, w_heads, w_ffn, vecs)
    out = jax.block_until_ready(out)
    self_attn = jax.block_until_ready(self_attn)

    assert out.shape == (B, L, D_MODEL)
    assert self_attn.shape == (B, L, L)
    assert bool(jnp.all(jnp.isfinite(out)))
    assert bool(jnp.all(jnp.isfinite(self_attn)))
    # exact softmax reciprocal -> rows sum to 1 to f32 precision
    assert bool(jnp.all(jnp.abs(jnp.sum(self_attn, -1) - 1.0) < 1e-3))

    ref_out, ref_attn = reference_forward(src, raw)
    # tolerance covers bf16 MXU operands (f32 accumulation) vs f32 reference
    assert bool(jnp.max(jnp.abs(out - ref_out)) < 2e-2)
    assert bool(jnp.max(jnp.abs(self_attn - ref_attn)) < 2e-2)

    print("KERNEL_OK")
</pallas_src>

<mosaic_0001>
module attributes {stable_mosaic.version = 11 : i64} {
  func.func @encoder_layer_kernel(%arg0: memref<2x8x32xf32, #tpu.memory_space<vmem>>, %arg1: memref<16x32x32xbf16, #tpu.memory_space<vmem>>, %arg2: memref<64x64xbf16, #tpu.memory_space<vmem>>, %arg3: memref<24x64xf32, #tpu.memory_space<vmem>>, %arg4: memref<2x8x32xf32, #tpu.memory_space<vmem>>, %arg5: memref<2x8x8xf32, #tpu.memory_space<vmem>>) attributes {dimension_semantics = [], scalar_prefetch = 0 : i64, scratch_operands = 0 : i64, tpu.core_type = #tpu.core_type<tc>} {
    %c0 = arith.constant 0 : index
    %c0_0 = arith.constant 0 : index
    %c0_1 = arith.constant 0 : index
    %0 = vector.load %arg0[%c0, %c0_0, %c0_1] : memref<2x8x32xf32, #tpu.memory_space<vmem>>, vector<2x8x32xf32>
    %1 = vector.shape_cast %0 : vector<2x8x32xf32> to vector<16x32xf32>
    %2 = arith.truncf %1 : vector<16x32xf32> to vector<16x32xbf16>
    %c0_2 = arith.constant 0 : index
    %c0_3 = arith.constant 0 : index
    %3 = vector.load %arg3[%c0_2, %c0_3] : memref<24x64xf32, #tpu.memory_space<vmem>>, vector<24x64xf32>
    %cst = arith.constant 0.000000e+00 : f32
    %4 = vector.broadcast %cst : f32 to vector<2x8x8xf32>
    %cst_4 = arith.constant 0.000000e+00 : f32
    %5 = vector.broadcast %cst_4 : f32 to vector<16x32xf32>
    %c0_5 = arith.constant 0 : index
    %c0_6 = arith.constant 0 : index
    %c0_7 = arith.constant 0 : index
    %6 = vector.load %arg1[%c0_5, %c0_6, %c0_7] : memref<16x32x32xbf16, #tpu.memory_space<vmem>>, vector<1x32x32xbf16>
    %7 = vector.shape_cast %6 : vector<1x32x32xbf16> to vector<32x32xbf16>
    %c4 = arith.constant 4 : index
    %c0_8 = arith.constant 0 : index
    %c0_9 = arith.constant 0 : index
    %8 = vector.load %arg1[%c4, %c0_8, %c0_9] : memref<16x32x32xbf16, #tpu.memory_space<vmem>>, vector<1x32x32xbf16>
    %9 = vector.shape_cast %8 : vector<1x32x32xbf16> to vector<32x32xbf16>
    %c8 = arith.constant 8 : index
    %c0_10 = arith.constant 0 : index
    %c0_11 = arith.constant 0 : index
    %10 = vector.load %arg1[%c8, %c0_10, %c0_11] : memref<16x32x32xbf16, #tpu.memory_space<vmem>>, vector<1x32x32xbf16>
    %11 = vector.shape_cast %10 : vector<1x32x32xbf16> to vector<32x32xbf16>
    %c12 = arith.constant 12 : index
    %c0_12 = arith.constant 0 : index
    %c0_13 = arith.constant 0 : index
    %12 = vector.load %arg1[%c12, %c0_12, %c0_13] : memref<16x32x32xbf16, #tpu.memory_space<vmem>>, vector<1x32x32xbf16>
    %13 = vector.shape_cast %12 : vector<1x32x32xbf16> to vector<32x32xbf16>
    %cst_14 = arith.constant dense<0.000000e+00> : vector<16x32xf32>
    %14 = tpu.matmul %2, %7, %cst_14 {dimension_numbers = #tpu.dot_dimension_numbers<[1], [0], [0], [1], [0, 0, 1, 1], [], []>} : vector<16x32xbf16>, vector<32x32xbf16>, vector<16x32xf32> -> vector<16x32xf32>
    %cst_15 = arith.constant dense<0.000000e+00> : vector<16x32xf32>
    %15 = tpu.matmul %2, %9, %cst_15 {dimension_numbers = #tpu.dot_dimension_numbers<[1], [0], [0], [1], [0, 0, 1, 1], [], []>} : vector<16x32xbf16>, vector<32x32xbf16>, vector<16x32xf32> -> vector<16x32xf32>
    %cst_16 = arith.constant dense<0.000000e+00> : vector<16x32xf32>
    %16 = tpu.matmul %2, %11, %cst_16 {dimension_numbers = #tpu.dot_dimension_numbers<[1], [0], [0], [1], [0, 0, 1, 1], [], []>} : vector<16x32xbf16>, vector<32x32xbf16>, vector<16x32xf32> -> vector<16x32xf32>
    %17 = vector.extract_strided_slice %3 {offsets = [0, 0], sizes = [1, 32], strides = [1, 1]} : vector<24x64xf32> to vector<1x32xf32>
    %18 = vector.broadcast %17 : vector<1x32xf32> to vector<16x32xf32>
    %19 = arith.addf %14, %18 : vector<16x32xf32>
    %20 = vector.extract_strided_slice %3 {offsets = [4, 0], sizes = [1, 32], strides = [1, 1]} : vector<24x64xf32> to vector<1x32xf32>
    %21 = vector.broadcast %20 : vector<1x32xf32> to vector<16x32xf32>
    %22 = arith.addf %15, %21 : vector<16x32xf32>
    %23 = vector.extract_strided_slice %3 {offsets = [8, 0], sizes = [1, 32], strides = [1, 1]} : vector<24x64xf32> to vector<1x32xf32>
    %24 = vector.broadcast %23 : vector<1x32xf32> to vector<16x32xf32>
    %25 = arith.addf %16, %24 : vector<16x32xf32>
    %26 = vector.shape_cast %19 : vector<16x32xf32> to vector<2x8x32xf32>
    %27 = arith.truncf %26 : vector<2x8x32xf32> to vector<2x8x32xbf16>
    %28 = vector.shape_cast %22 : vector<16x32xf32> to vector<2x8x32xf32>
    %29 = arith.truncf %28 : vector<2x8x32xf32> to vector<2x8x32xbf16>
    %30 = vector.shape_cast %25 : vector<16x32xf32> to vector<2x8x32xf32>
    %31 = arith.truncf %30 : vector<2x8x32xf32> to vector<2x8x32xbf16>
    "tpu.trace_start"() <{level = 10 : i32, message = "bqd,bkd->bqk"}> : () -> ()
    %cst_17 = arith.constant dense<0.000000e+00> : vector<2x8x8xf32>
    %32 = tpu.matmul %27, %29, %cst_17 {dimension_numbers = #tpu.dot_dimension_numbers<[2], [2], [1], [1], [0, 0, 0, 1, 1, 1], [0], [0]>} : vector<2x8x32xbf16>, vector<2x8x32xbf16>, vector<2x8x8xf32> -> vector<2x8x8xf32>
    "tpu.trace_stop"() : () -> ()
    %cst_18 = arith.constant dense<0xFF800000> : vector<2x8xf32>
    %33 = vector.multi_reduction <maximumf>, %32, %cst_18 [2] : vector<2x8x8xf32> to vector<2x8xf32>
    %34 = vector.shape_cast %33 : vector<2x8xf32> to vector<2x8x1xf32>
    %35 = vector.broadcast %34 : vector<2x8x1xf32> to vector<2x8x8xf32>
    %36 = arith.subf %32, %35 : vector<2x8x8xf32>
    %37 = math.exp %36 : vector<2x8x8xf32>
    %cst_19 = arith.constant dense<0.000000e+00> : vector<2x8xf32>
    %38 = vector.multi_reduction <add>, %37, %cst_19 [2] : vector<2x8x8xf32> to vector<2x8xf32>
    %39 = vector.shape_cast %38 : vector<2x8xf32> to vector<2x8x1xf32>
    %40 = tpu.reciprocal %39 : vector<2x8x1xf32> -> vector<2x8x1xf32>
    %41 = vector.broadcast %40 : vector<2x8x1xf32> to vector<2x8x8xf32>
    %42 = arith.mulf %37, %41 : vector<2x8x8xf32>
    %43 = arith.addf %4, %42 : vector<2x8x8xf32>
    %44 = arith.truncf %42 : vector<2x8x8xf32> to vector<2x8x8xbf16>
    "tpu.trace_start"() <{level = 10 : i32, message = "bqk,bkd->bqd"}> : () -> ()
    %cst_20 = arith.constant dense<0.000000e+00> : vector<2x8x32xf32>
    %45 = tpu.matmul %44, %31, %cst_20 {dimension_numbers = #tpu.dot_dimension_numbers<[2], [1], [1], [2], [0, 0, 0, 1, 1, 2], [0], [0]>} : vector<2x8x8xbf16>, vector<2x8x32xbf16>, vector<2x8x32xf32> -> vector<2x8x32xf32>
    "tpu.trace_stop"() : () -> ()
    %46 = vector.shape_cast %45 : vector<2x8x32xf32> to vector<16x32xf32>
    %47 = arith.truncf %46 : vector<16x32xf32> to vector<16x32xbf16>
    %cst_21 = arith.constant dense<0.000000e+00> : vector<16x32xf32>
    %48 = tpu.matmul %47, %13, %cst_21 {dimension_numbers = #tpu.dot_dimension_numbers<[1], [0], [0], [1], [0, 0, 1, 1], [], []>} : vector<16x32xbf16>, vector<32x32xbf16>, vector<16x32xf32> -> vector<16x32xf32>
    %49 = arith.addf %5, %48 : vector<16x32xf32>
    %c1 = arith.constant 1 : index
    %c0_22 = arith.constant 0 : index
    %c0_23 = arith.constant 0 : index
    %50 = vector.load %arg1[%c1, %c0_22, %c0_23] : memref<16x32x32xbf16, #tpu.memory_space<vmem>>, vector<1x32x32xbf16>
    %51 = vector.shape_cast %50 : vector<1x32x32xbf16> to vector<32x32xbf16>
    %c5 = arith.constant 5 : index
    %c0_24 = arith.constant 0 : index
    %c0_25 = arith.constant 0 : index
    %52 = vector.load %arg1[%c5, %c0_24, %c0_25] : memref<16x32x32xbf16, #tpu.memory_space<vmem>>, vector<1x32x32xbf16>
    %53 = vector.shape_cast %52 : vector<1x32x32xbf16> to vector<32x32xbf16>
    %c9 = arith.constant 9 : index
    %c0_26 = arith.constant 0 : index
    %c0_27 = arith.constant 0 : index
    %54 = vector.load %arg1[%c9, %c0_26, %c0_27] : memref<16x32x32xbf16, #tpu.memory_space<vmem>>, vector<1x32x32xbf16>
    %55 = vector.shape_cast %54 : vector<1x32x32xbf16> to vector<32x32xbf16>
    %c13 = arith.constant 13 : index
    %c0_28 = arith.constant 0 : index
    %c0_29 = arith.constant 0 : index
    %56 = vector.load %arg1[%c13, %c0_28, %c0_29] : memref<16x32x32xbf16, #tpu.memory_space<vmem>>, vector<1x32x32xbf16>
    %57 = vector.shape_cast %56 : vector<1x32x32xbf16> to vector<32x32xbf16>
    %cst_30 = arith.constant dense<0.000000e+00> : vector<16x32xf32>
    %58 = tpu.matmul %2, %51, %cst_30 {dimension_numbers = #tpu.dot_dimension_numbers<[1], [0], [0], [1], [0, 0, 1, 1], [], []>} : vector<16x32xbf16>, vector<32x32xbf16>, vector<16x32xf32> -> vector<16x32xf32>
    %cst_31 = arith.constant dense<0.000000e+00> : vector<16x32xf32>
    %59 = tpu.matmul %2, %53, %cst_31 {dimension_numbers = #tpu.dot_dimension_numbers<[1], [0], [0], [1], [0, 0, 1, 1], [], []>} : vector<16x32xbf16>, vector<32x32xbf16>, vector<16x32xf32> -> vector<16x32xf32>
    %cst_32 = arith.constant dense<0.000000e+00> : vector<16x32xf32>
    %60 = tpu.matmul %2, %55, %cst_32 {dimension_numbers = #tpu.dot_dimension_numbers<[1], [0], [0], [1], [0, 0, 1, 1], [], []>} : vector<16x32xbf16>, vector<32x32xbf16>, vector<16x32xf32> -> vector<16x32xf32>
    %61 = vector.extract_strided_slice %3 {offsets = [1, 0], sizes = [1, 32], strides = [1, 1]} : vector<24x64xf32> to vector<1x32xf32>
    %62 = vector.broadcast %61 : vector<1x32xf32> to vector<16x32xf32>
    %63 = arith.addf %58, %62 : vector<16x32xf32>
    %64 = vector.extract_strided_slice %3 {offsets = [5, 0], sizes = [1, 32], strides = [1, 1]} : vector<24x64xf32> to vector<1x32xf32>
    %65 = vector.broadcast %64 : vector<1x32xf32> to vector<16x32xf32>
    %66 = arith.addf %59, %65 : vector<16x32xf32>
    %67 = vector.extract_strided_slice %3 {offsets = [9, 0], sizes = [1, 32], strides = [1, 1]} : vector<24x64xf32> to vector<1x32xf32>
    %68 = vector.broadcast %67 : vector<1x32xf32> to vector<16x32xf32>
    %69 = arith.addf %60, %68 : vector<16x32xf32>
    %70 = vector.shape_cast %63 : vector<16x32xf32> to vector<2x8x32xf32>
    %71 = arith.truncf %70 : vector<2x8x32xf32> to vector<2x8x32xbf16>
    %72 = vector.shape_cast %66 : vector<16x32xf32> to vector<2x8x32xf32>
    %73 = arith.truncf %72 : vector<2x8x32xf32> to vector<2x8x32xbf16>
    %74 = vector.shape_cast %69 : vector<16x32xf32> to vector<2x8x32xf32>
    %75 = arith.truncf %74 : vector<2x8x32xf32> to vector<2x8x32xbf16>
    "tpu.trace_start"() <{level = 10 : i32, message = "bqd,bkd->bqk"}> : () -> ()
    %cst_33 = arith.constant dense<0.000000e+00> : vector<2x8x8xf32>
    %76 = tpu.matmul %71, %73, %cst_33 {dimension_numbers = #tpu.dot_dimension_numbers<[2], [2], [1], [1], [0, 0, 0, 1, 1, 1], [0], [0]>} : vector<2x8x32xbf16>, vector<2x8x32xbf16>, vector<2x8x8xf32> -> vector<2x8x8xf32>
    "tpu.trace_stop"() : () -> ()
    %cst_34 = arith.constant dense<0xFF800000> : vector<2x8xf32>
    %77 = vector.multi_reduction <maximumf>, %76, %cst_34 [2] : vector<2x8x8xf32> to vector<2x8xf32>
    %78 = vector.shape_cast %77 : vector<2x8xf32> to vector<2x8x1xf32>
    %79 = vector.broadcast %78 : vector<2x8x1xf32> to vector<2x8x8xf32>
    %80 = arith.subf %76, %79 : vector<2x8x8xf32>
    %81 = math.exp %80 : vector<2x8x8xf32>
    %cst_35 = arith.constant dense<0.000000e+00> : vector<2x8xf32>
    %82 = vector.multi_reduction <add>, %81, %cst_35 [2] : vector<2x8x8xf32> to vector<2x8xf32>
    %83 = vector.shape_cast %82 : vector<2x8xf32> to vector<2x8x1xf32>
    %84 = tpu.reciprocal %83 : vector<2x8x1xf32> -> vector<2x8x1xf32>
    %85 = vector.broadcast %84 : vector<2x8x1xf32> to vector<2x8x8xf32>
    %86 = arith.mulf %81, %85 : vector<2x8x8xf32>
    %87 = arith.addf %43, %86 : vector<2x8x8xf32>
    %88 = arith.truncf %86 : vector<2x8x8xf32> to vector<2x8x8xbf16>
    "tpu.trace_start"() <{level = 10 : i32, message = "bqk,bkd->bqd"}> : () -> ()
    %cst_36 = arith.constant dense<0.000000e+00> : vector<2x8x32xf32>
    %89 = tpu.matmul %88, %75, %cst_36 {dimension_numbers = #tpu.dot_dimension_numbers<[2], [1], [1], [2], [0, 0, 0, 1, 1, 2], [0], [0]>} : vector<2x8x8xbf16>, vector<2x8x32xbf16>, vector<2x8x32xf32> -> vector<2x8x32xf32>
    "tpu.trace_stop"() : () -> ()
    %90 = vector.shape_cast %89 : vector<2x8x32xf32> to vector<16x32xf32>
    %91 = arith.truncf %90 : vector<16x32xf32> to vector<16x32xbf16>
    %cst_37 = arith.constant dense<0.000000e+00> : vector<16x32xf32>
    %92 = tpu.matmul %91, %57, %cst_37 {dimension_numbers = #tpu.dot_dimension_numbers<[1], [0], [0], [1], [0, 0, 1, 1], [], []>} : vector<16x32xbf16>, vector<32x32xbf16>, vector<16x32xf32> -> vector<16x32xf32>
    %93 = arith.addf %49, %92 : vector<16x32xf32>
    %c2 = arith.constant 2 : index
    %c0_38 = arith.constant 0 : index
    %c0_39 = arith.constant 0 : index
    %94 = vector.load %arg1[%c2, %c0_38, %c0_39] : memref<16x32x32xbf16, #tpu.memory_space<vmem>>, vector<1x32x32xbf16>
    %95 = vector.shape_cast %94 : vector<1x32x32xbf16> to vector<32x32xbf16>
    %c6 = arith.constant 6 : index
    %c0_40 = arith.constant 0 : index
    %c0_41 = arith.constant 0 : index
    %96 = vector.load %arg1[%c6, %c0_40, %c0_41] : memref<16x32x32xbf16, #tpu.memory_space<vmem>>, vector<1x32x32xbf16>
    %97 = vector.shape_cast %96 : vector<1x32x32xbf16> to vector<32x32xbf16>
    %c10 = arith.constant 10 : index
    %c0_42 = arith.constant 0 : index
    %c0_43 = arith.constant 0 : index
    %98 = vector.load %arg1[%c10, %c0_42, %c0_43] : memref<16x32x32xbf16, #tpu.memory_space<vmem>>, vector<1x32x32xbf16>
    %99 = vector.shape_cast %98 : vector<1x32x32xbf16> to vector<32x32xbf16>
    %c14 = arith.constant 14 : index
    %c0_44 = arith.constant 0 : index
    %c0_45 = arith.constant 0 : index
    %100 = vector.load %arg1[%c14, %c0_44, %c0_45] : memref<16x32x32xbf16, #tpu.memory_space<vmem>>, vector<1x32x32xbf16>
    %101 = vector.shape_cast %100 : vector<1x32x32xbf16> to vector<32x32xbf16>
    %cst_46 = arith.constant dense<0.000000e+00> : vector<16x32xf32>
    %102 = tpu.matmul %2, %95, %cst_46 {dimension_numbers = #tpu.dot_dimension_numbers<[1], [0], [0], [1], [0, 0, 1, 1], [], []>} : vector<16x32xbf16>, vector<32x32xbf16>, vector<16x32xf32> -> vector<16x32xf32>
    %cst_47 = arith.constant dense<0.000000e+00> : vector<16x32xf32>
    %103 = tpu.matmul %2, %97, %cst_47 {dimension_numbers = #tpu.dot_dimension_numbers<[1], [0], [0], [1], [0, 0, 1, 1], [], []>} : vector<16x32xbf16>, vector<32x32xbf16>, vector<16x32xf32> -> vector<16x32xf32>
    %cst_48 = arith.constant dense<0.000000e+00> : vector<16x32xf32>
    %104 = tpu.matmul %2, %99, %cst_48 {dimension_numbers = #tpu.dot_dimension_numbers<[1], [0], [0], [1], [0, 0, 1, 1], [], []>} : vector<16x32xbf16>, vector<32x32xbf16>, vector<16x32xf32> -> vector<16x32xf32>
    %105 = vector.extract_strided_slice %3 {offsets = [2, 0], sizes = [1, 32], strides = [1, 1]} : vector<24x64xf32> to vector<1x32xf32>
    %106 = vector.broadcast %105 : vector<1x32xf32> to vector<16x32xf32>
    %107 = arith.addf %102, %106 : vector<16x32xf32>
    %108 = vector.extract_strided_slice %3 {offsets = [6, 0], sizes = [1, 32], strides = [1, 1]} : vector<24x64xf32> to vector<1x32xf32>
    %109 = vector.broadcast %108 : vector<1x32xf32> to vector<16x32xf32>
    %110 = arith.addf %103, %109 : vector<16x32xf32>
    %111 = vector.extract_strided_slice %3 {offsets = [10, 0], sizes = [1, 32], strides = [1, 1]} : vector<24x64xf32> to vector<1x32xf32>
    %112 = vector.broadcast %111 : vector<1x32xf32> to vector<16x32xf32>
    %113 = arith.addf %104, %112 : vector<16x32xf32>
    %114 = vector.shape_cast %107 : vector<16x32xf32> to vector<2x8x32xf32>
    %115 = arith.truncf %114 : vector<2x8x32xf32> to vector<2x8x32xbf16>
    %116 = vector.shape_cast %110 : vector<16x32xf32> to vector<2x8x32xf32>
    %117 = arith.truncf %116 : vector<2x8x32xf32> to vector<2x8x32xbf16>
    %118 = vector.shape_cast %113 : vector<16x32xf32> to vector<2x8x32xf32>
    %119 = arith.truncf %118 : vector<2x8x32xf32> to vector<2x8x32xbf16>
    "tpu.trace_start"() <{level = 10 : i32, message = "bqd,bkd->bqk"}> : () -> ()
    %cst_49 = arith.constant dense<0.000000e+00> : vector<2x8x8xf32>
    %120 = tpu.matmul %115, %117, %cst_49 {dimension_numbers = #tpu.dot_dimension_numbers<[2], [2], [1], [1], [0, 0, 0, 1, 1, 1], [0], [0]>} : vector<2x8x32xbf16>, vector<2x8x32xbf16>, vector<2x8x8xf32> -> vector<2x8x8xf32>
    "tpu.trace_stop"() : () -> ()
    %cst_50 = arith.constant dense<0xFF800000> : vector<2x8xf32>
    %121 = vector.multi_reduction <maximumf>, %120, %cst_50 [2] : vector<2x8x8xf32> to vector<2x8xf32>
    %122 = vector.shape_cast %121 : vector<2x8xf32> to vector<2x8x1xf32>
    %123 = vector.broadcast %122 : vector<2x8x1xf32> to vector<2x8x8xf32>
    %124 = arith.subf %120, %123 : vector<2x8x8xf32>
    %125 = math.exp %124 : vector<2x8x8xf32>
    %cst_51 = arith.constant dense<0.000000e+00> : vector<2x8xf32>
    %126 = vector.multi_reduction <add>, %125, %cst_51 [2] : vector<2x8x8xf32> to vector<2x8xf32>
    %127 = vector.shape_cast %126 : vector<2x8xf32> to vector<2x8x1xf32>
    %128 = tpu.reciprocal %127 : vector<2x8x1xf32> -> vector<2x8x1xf32>
    %129 = vector.broadcast %128 : vector<2x8x1xf32> to vector<2x8x8xf32>
    %130 = arith.mulf %125, %129 : vector<2x8x8xf32>
    %131 = arith.addf %87, %130 : vector<2x8x8xf32>
    %132 = arith.truncf %130 : vector<2x8x8xf32> to vector<2x8x8xbf16>
    "tpu.trace_start"() <{level = 10 : i32, message = "bqk,bkd->bqd"}> : () -> ()
    %cst_52 = arith.constant dense<0.000000e+00> : vector<2x8x32xf32>
    %133 = tpu.matmul %132, %119, %cst_52 {dimension_numbers = #tpu.dot_dimension_numbers<[2], [1], [1], [2], [0, 0, 0, 1, 1, 2], [0], [0]>} : vector<2x8x8xbf16>, vector<2x8x32xbf16>, vector<2x8x32xf32> -> vector<2x8x32xf32>
    "tpu.trace_stop"() : () -> ()
    %134 = vector.shape_cast %133 : vector<2x8x32xf32> to vector<16x32xf32>
    %135 = arith.truncf %134 : vector<16x32xf32> to vector<16x32xbf16>
    %cst_53 = arith.constant dense<0.000000e+00> : vector<16x32xf32>
    %136 = tpu.matmul %135, %101, %cst_53 {dimension_numbers = #tpu.dot_dimension_numbers<[1], [0], [0], [1], [0, 0, 1, 1], [], []>} : vector<16x32xbf16>, vector<32x32xbf16>, vector<16x32xf32> -> vector<16x32xf32>
    %137 = arith.addf %93, %136 : vector<16x32xf32>
    %c3 = arith.constant 3 : index
    %c0_54 = arith.constant 0 : index
    %c0_55 = arith.constant 0 : index
    %138 = vector.load %arg1[%c3, %c0_54, %c0_55] : memref<16x32x32xbf16, #tpu.memory_space<vmem>>, vector<1x32x32xbf16>
    %139 = vector.shape_cast %138 : vector<1x32x32xbf16> to vector<32x32xbf16>
    %c7 = arith.constant 7 : index
    %c0_56 = arith.constant 0 : index
    %c0_57 = arith.constant 0 : index
    %140 = vector.load %arg1[%c7, %c0_56, %c0_57] : memref<16x32x32xbf16, #tpu.memory_space<vmem>>, vector<1x32x32xbf16>
    %141 = vector.shape_cast %140 : vector<1x32x32xbf16> to vector<32x32xbf16>
    %c11 = arith.constant 11 : index
    %c0_58 = arith.constant 0 : index
    %c0_59 = arith.constant 0 : index
    %142 = vector.load %arg1[%c11, %c0_58, %c0_59] : memref<16x32x32xbf16, #tpu.memory_space<vmem>>, vector<1x32x32xbf16>
    %143 = vector.shape_cast %142 : vector<1x32x32xbf16> to vector<32x32xbf16>
    %c15 = arith.constant 15 : index
    %c0_60 = arith.constant 0 : index
    %c0_61 = arith.constant 0 : index
    %144 = vector.load %arg1[%c15, %c0_60, %c0_61] : memref<16x32x32xbf16, #tpu.memory_space<vmem>>, vector<1x32x32xbf16>
    %145 = vector.shape_cast %144 : vector<1x32x32xbf16> to vector<32x32xbf16>
    %cst_62 = arith.constant dense<0.000000e+00> : vector<16x32xf32>
    %146 = tpu.matmul %2, %139, %cst_62 {dimension_numbers = #tpu.dot_dimension_numbers<[1], [0], [0], [1], [0, 0, 1, 1], [], []>} : vector<16x32xbf16>, vector<32x32xbf16>, vector<16x32xf32> -> vector<16x32xf32>
    %cst_63 = arith.constant dense<0.000000e+00> : vector<16x32xf32>
    %147 = tpu.matmul %2, %141, %cst_63 {dimension_numbers = #tpu.dot_dimension_numbers<[1], [0], [0], [1], [0, 0, 1, 1], [], []>} : vector<16x32xbf16>, vector<32x32xbf16>, vector<16x32xf32> -> vector<16x32xf32>
    %cst_64 = arith.constant dense<0.000000e+00> : vector<16x32xf32>
    %148 = tpu.matmul %2, %143, %cst_64 {dimension_numbers = #tpu.dot_dimension_numbers<[1], [0], [0], [1], [0, 0, 1, 1], [], []>} : vector<16x32xbf16>, vector<32x32xbf16>, vector<16x32xf32> -> vector<16x32xf32>
    %149 = vector.extract_strided_slice %3 {offsets = [3, 0], sizes = [1, 32], strides = [1, 1]} : vector<24x64xf32> to vector<1x32xf32>
    %150 = vector.broadcast %149 : vector<1x32xf32> to vector<16x32xf32>
    %151 = arith.addf %146, %150 : vector<16x32xf32>
    %152 = vector.extract_strided_slice %3 {offsets = [7, 0], sizes = [1, 32], strides = [1, 1]} : vector<24x64xf32> to vector<1x32xf32>
    %153 = vector.broadcast %152 : vector<1x32xf32> to vector<16x32xf32>
    %154 = arith.addf %147, %153 : vector<16x32xf32>
    %155 = vector.extract_strided_slice %3 {offsets = [11, 0], sizes = [1, 32], strides = [1, 1]} : vector<24x64xf32> to vector<1x32xf32>
    %156 = vector.broadcast %155 : vector<1x32xf32> to vector<16x32xf32>
    %157 = arith.addf %148, %156 : vector<16x32xf32>
    %158 = vector.shape_cast %151 : vector<16x32xf32> to vector<2x8x32xf32>
    %159 = arith.truncf %158 : vector<2x8x32xf32> to vector<2x8x32xbf16>
    %160 = vector.shape_cast %154 : vector<16x32xf32> to vector<2x8x32xf32>
    %161 = arith.truncf %160 : vector<2x8x32xf32> to vector<2x8x32xbf16>
    %162 = vector.shape_cast %157 : vector<16x32xf32> to vector<2x8x32xf32>
    %163 = arith.truncf %162 : vector<2x8x32xf32> to vector<2x8x32xbf16>
    "tpu.trace_start"() <{level = 10 : i32, message = "bqd,bkd->bqk"}> : () -> ()
    %cst_65 = arith.constant dense<0.000000e+00> : vector<2x8x8xf32>
    %164 = tpu.matmul %159, %161, %cst_65 {dimension_numbers = #tpu.dot_dimension_numbers<[2], [2], [1], [1], [0, 0, 0, 1, 1, 1], [0], [0]>} : vector<2x8x32xbf16>, vector<2x8x32xbf16>, vector<2x8x8xf32> -> vector<2x8x8xf32>
    "tpu.trace_stop"() : () -> ()
    %cst_66 = arith.constant dense<0xFF800000> : vector<2x8xf32>
    %165 = vector.multi_reduction <maximumf>, %164, %cst_66 [2] : vector<2x8x8xf32> to vector<2x8xf32>
    %166 = vector.shape_cast %165 : vector<2x8xf32> to vector<2x8x1xf32>
    %167 = vector.broadcast %166 : vector<2x8x1xf32> to vector<2x8x8xf32>
    %168 = arith.subf %164, %167 : vector<2x8x8xf32>
    %169 = math.exp %168 : vector<2x8x8xf32>
    %cst_67 = arith.constant dense<0.000000e+00> : vector<2x8xf32>
    %170 = vector.multi_reduction <add>, %169, %cst_67 [2] : vector<2x8x8xf32> to vector<2x8xf32>
    %171 = vector.shape_cast %170 : vector<2x8xf32> to vector<2x8x1xf32>
    %172 = tpu.reciprocal %171 : vector<2x8x1xf32> -> vector<2x8x1xf32>
    %173 = vector.broadcast %172 : vector<2x8x1xf32> to vector<2x8x8xf32>
    %174 = arith.mulf %169, %173 : vector<2x8x8xf32>
    %175 = arith.addf %131, %174 : vector<2x8x8xf32>
    %176 = arith.truncf %174 : vector<2x8x8xf32> to vector<2x8x8xbf16>
    "tpu.trace_start"() <{level = 10 : i32, message = "bqk,bkd->bqd"}> : () -> ()
    %cst_68 = arith.constant dense<0.000000e+00> : vector<2x8x32xf32>
    %177 = tpu.matmul %176, %163, %cst_68 {dimension_numbers = #tpu.dot_dimension_numbers<[2], [1], [1], [2], [0, 0, 0, 1, 1, 2], [0], [0]>} : vector<2x8x8xbf16>, vector<2x8x32xbf16>, vector<2x8x32xf32> -> vector<2x8x32xf32>
    "tpu.trace_stop"() : () -> ()
    %178 = vector.shape_cast %177 : vector<2x8x32xf32> to vector<16x32xf32>
    %179 = arith.truncf %178 : vector<16x32xf32> to vector<16x32xbf16>
    %cst_69 = arith.constant dense<0.000000e+00> : vector<16x32xf32>
    %180 = tpu.matmul %179, %145, %cst_69 {dimension_numbers = #tpu.dot_dimension_numbers<[1], [0], [0], [1], [0, 0, 1, 1], [], []>} : vector<16x32xbf16>, vector<32x32xbf16>, vector<16x32xf32> -> vector<16x32xf32>
    %181 = arith.addf %137, %180 : vector<16x32xf32>
    %182 = vector.extract_strided_slice %3 {offsets = [12, 0], sizes = [1, 32], strides = [1, 1]} : vector<24x64xf32> to vector<1x32xf32>
    %183 = vector.broadcast %182 : vector<1x32xf32> to vector<16x32xf32>
    %184 = arith.addf %181, %183 : vector<16x32xf32>
    %185 = arith.addf %1, %184 : vector<16x32xf32>
    %186 = vector.extract_strided_slice %3 {offsets = [15, 0], sizes = [1, 32], strides = [1, 1]} : vector<24x64xf32> to vector<1x32xf32>
    %187 = vector.extract_strided_slice %3 {offsets = [16, 0], sizes = [1, 32], strides = [1, 1]} : vector<24x64xf32> to vector<1x32xf32>
    %cst_70 = arith.constant dense<0.000000e+00> : vector<16xf32>
    %188 = vector.multi_reduction <add>, %185, %cst_70 [1] : vector<16x32xf32> to vector<16xf32>
    %189 = vector.shape_cast %188 : vector<16xf32> to vector<16x1xf32>
    %cst_71 = arith.constant 3.200000e+01 : f32
    %190 = vector.broadcast %cst_71 : f32 to vector<16x1xf32>
    %191 = arith.divf %189, %190 : vector<16x1xf32>
    %192 = vector.broadcast %191 : vector<16x1xf32> to vector<16x32xf32>
    %193 = arith.subf %185, %192 : vector<16x32xf32>
    %194 = arith.mulf %193, %193 : vector<16x32xf32>
    %cst_72 = arith.constant dense<0.000000e+00> : vector<16xf32>
    %195 = vector.multi_reduction <add>, %194, %cst_72 [1] : vector<16x32xf32> to vector<16xf32>
    %196 = vector.shape_cast %195 : vector<16xf32> to vector<16x1xf32>
    %cst_73 = arith.constant 3.200000e+01 : f32
    %197 = vector.broadcast %cst_73 : f32 to vector<16x1xf32>
    %198 = arith.divf %196, %197 : vector<16x1xf32>
    %199 = vector.broadcast %191 : vector<16x1xf32> to vector<16x32xf32>
    %200 = arith.subf %185, %199 : vector<16x32xf32>
    %cst_74 = arith.constant 9.99999997E-7 : f32
    %201 = vector.broadcast %cst_74 : f32 to vector<16x1xf32>
    %202 = arith.addf %198, %201 : vector<16x1xf32>
    %203 = math.rsqrt %202 : vector<16x1xf32>
    %204 = vector.broadcast %203 : vector<16x1xf32> to vector<16x32xf32>
    %205 = arith.mulf %200, %204 : vector<16x32xf32>
    %206 = vector.broadcast %186 : vector<1x32xf32> to vector<16x32xf32>
    %207 = arith.mulf %205, %206 : vector<16x32xf32>
    %208 = vector.broadcast %187 : vector<1x32xf32> to vector<16x32xf32>
    %209 = arith.addf %207, %208 : vector<16x32xf32>
    %c0_75 = arith.constant 0 : index
    %c0_76 = arith.constant 0 : index
    %210 = vector.load %arg2[%c0_75, %c0_76] : memref<64x64xbf16, #tpu.memory_space<vmem>>, vector<32x64xbf16>
    %c32 = arith.constant 32 : index
    %c0_77 = arith.constant 0 : index
    %211 = vector.load %arg2[%c32, %c0_77] : memref<64x64xbf16, #tpu.memory_space<vmem>>, vector<32x64xbf16>
    %212 = arith.truncf %209 : vector<16x32xf32> to vector<16x32xbf16>
    %cst_78 = arith.constant dense<0.000000e+00> : vector<16x64xf32>
    %213 = tpu.matmul %212, %210, %cst_78 {dimension_numbers = #tpu.dot_dimension_numbers<[1], [0], [0], [1], [0, 0, 1, 1], [], []>} : vector<16x32xbf16>, vector<32x64xbf16>, vector<16x64xf32> -> vector<16x64xf32>
    %214 = vector.extract_strided_slice %3 {offsets = [13, 0], sizes = [1, 64], strides = [1, 1]} : vector<24x64xf32> to vector<1x64xf32>
    %215 = vector.broadcast %214 : vector<1x64xf32> to vector<16x64xf32>
    %216 = arith.addf %213, %215 : vector<16x64xf32>
    %cst_79 = arith.constant 0.000000e+00 : f32
    %217 = vector.broadcast %cst_79 : f32 to vector<16x64xf32>
    %218 = arith.maximumf %216, %217 : vector<16x64xf32>
    %219 = arith.truncf %218 : vector<16x64xf32> to vector<16x64xbf16>
    %cst_80 = arith.constant dense<0.000000e+00> : vector<16x32xf32>
    %220 = tpu.matmul %219, %211, %cst_80 {dimension_numbers = #tpu.dot_dimension_numbers<[1], [1], [0], [0], [0, 0, 1, 0], [], []>} : vector<16x64xbf16>, vector<32x64xbf16>, vector<16x32xf32> -> vector<16x32xf32>
    %221 = vector.extract_strided_slice %3 {offsets = [14, 0], sizes = [1, 32], strides = [1, 1]} : vector<24x64xf32> to vector<1x32xf32>
    %222 = vector.broadcast %221 : vector<1x32xf32> to vector<16x32xf32>
    %223 = arith.addf %220, %222 : vector<16x32xf32>
    %224 = arith.addf %209, %223 : vector<16x32xf32>
    %225 = vector.extract_strided_slice %3 {offsets = [17, 0], sizes = [1, 32], strides = [1, 1]} : vector<24x64xf32> to vector<1x32xf32>
    %226 = vector.extract_strided_slice %3 {offsets = [18, 0], sizes = [1, 32], strides = [1, 1]} : vector<24x64xf32> to vector<1x32xf32>
    %cst_81 = arith.constant dense<0.000000e+00> : vector<16xf32>
    %227 = vector.multi_reduction <add>, %224, %cst_81 [1] : vector<16x32xf32> to vector<16xf32>
    %228 = vector.shape_cast %227 : vector<16xf32> to vector<16x1xf32>
    %cst_82 = arith.constant 3.200000e+01 : f32
    %229 = vector.broadcast %cst_82 : f32 to vector<16x1xf32>
    %230 = arith.divf %228, %229 : vector<16x1xf32>
    %231 = vector.broadcast %230 : vector<16x1xf32> to vector<16x32xf32>
    %232 = arith.subf %224, %231 : vector<16x32xf32>
    %233 = arith.mulf %232, %232 : vector<16x32xf32>
    %cst_83 = arith.constant dense<0.000000e+00> : vector<16xf32>
    %234 = vector.multi_reduction <add>, %233, %cst_83 [1] : vector<16x32xf32> to vector<16xf32>
    %235 = vector.shape_cast %234 : vector<16xf32> to vector<16x1xf32>
    %cst_84 = arith.constant 3.200000e+01 : f32
    %236 = vector.broadcast %cst_84 : f32 to vector<16x1xf32>
    %237 = arith.divf %235, %236 : vector<16x1xf32>
    %238 = vector.broadcast %230 : vector<16x1xf32> to vector<16x32xf32>
    %239 = arith.subf %224, %238 : vector<16x32xf32>
    %cst_85 = arith.constant 9.99999997E-7 : f32
    %240 = vector.broadcast %cst_85 : f32 to vector<16x1xf32>
    %241 = arith.addf %237, %240 : vector<16x1xf32>
    %242 = math.rsqrt %241 : vector<16x1xf32>
    %243 = vector.broadcast %242 : vector<16x1xf32> to vector<16x32xf32>
    %244 = arith.mulf %239, %243 : vector<16x32xf32>
    %245 = vector.broadcast %225 : vector<1x32xf32> to vector<16x32xf32>
    %246 = arith.mulf %244, %245 : vector<16x32xf32>
    %247 = vector.broadcast %226 : vector<1x32xf32> to vector<16x32xf32>
    %248 = arith.addf %246, %247 : vector<16x32xf32>
    %249 = vector.shape_cast %248 : vector<16x32xf32> to vector<2x8x32xf32>
    %c0_86 = arith.constant 0 : index
    %c0_87 = arith.constant 0 : index
    %c0_88 = arith.constant 0 : index
    %250 = vector.load %arg4[%c0_86, %c0_87, %c0_88] : memref<2x8x32xf32, #tpu.memory_space<vmem>>, vector<2x8x32xf32>
    tpu.vector_store %arg4[%c0_86, %c0_87, %c0_88], %249 {strides = array<i32>} : memref<2x8x32xf32, #tpu.memory_space<vmem>>, vector<2x8x32xf32>,
    %cst_89 = arith.constant 2.500000e-01 : f32
    %251 = vector.broadcast %cst_89 : f32 to vector<2x8x8xf32>
    %252 = arith.mulf %175, %251 : vector<2x8x8xf32>
    %c0_90 = arith.constant 0 : index
    %c0_91 = arith.constant 0 : index
    %c0_92 = arith.constant 0 : index
    %253 = vector.load %arg5[%c0_90, %c0_91, %c0_92] : memref<2x8x8xf32, #tpu.memory_space<vmem>>, vector<2x8x8xf32>
    tpu.vector_store %arg5[%c0_90, %c0_91, %c0_92], %252 {strides = array<i32>} : memref<2x8x8xf32, #tpu.memory_space<vmem>>, vector<2x8x8xf32>,
    return
  }
}

</mosaic_0001>

<bundles_post_ra>
// kernel: transformer_encoder_layer.1
= control target key start
LH: loop header
LB: loop body
LE: loop exit
PB: predicated region body
PF: predicated region fallthrough
CT: control target
= control target key end

     0   :  { %11 = vsyncpa [#allocation3], 0  ;;  %s3238_s0 = inlined_call_operand.hbm [shape: f32[2,8,32], index: 0, kind: input, shape index: {}]   ;;  %s3239_s1 = inlined_call_operand.hbm [shape: bf16[16,32,32], index: 1, kind: input, shape index: {}]   ;;  %s3240_s2 = inlined_call_operand.hbm [shape: bf16[64,64], index: 2, kind: input, shape index: {}]   ;;  %s3241_s3 = inlined_call_operand.hbm [shape: f32[24,64], index: 3, kind: input, shape index: {}]   ;;  %s3242_s4 = inlined_call_operand.hbm [shape: f32[2,8,32], index: 4, kind: output, shape index: {0}]   ;;  %s3243_s5 = inlined_call_operand.hbm [shape: f32[2,8,8], index: 5, kind: output, shape index: {1}]  }
   0x1   :  { %12 = vsyncpa [#allocation6], 0 }
   0x2   :  { %13 = vsyncpa [#allocation9], 0 }
   0x3   :  { %14 = vsyncpa [#allocation4], 0 }
   0x4   :  { %15 = vsyncpa [#allocation12], 0  ;;  %s2830_s18 = smov [#allocation5]  }
   0x5   :  { %s33_s19 = sshll.u32 %s2830_s18, 4  ;;  %s34_s19 = int_to_ptr.vmem [resolvable:$true] %s33_s19 }
   0x6   :  { %s2708_s20 = scalar_lea.vmem %s34_s19, 4096  ;;  %p2713_p1 = scmp.lt.s32.totalorder %s34_s19, %s34_s19 }
   0x7   :  { %p2709_p0 = scmp.ne.s32.totalorder %s34_s19, %s2708_s20  ;;  %p2714_p2 = scmp.lt.s32.totalorder %s2708_s20, %s2708_s20 }
   0x9   :  { %p2715_p3 = por %p2714_p2, %p2713_p1 }
   0xb   :  { %p2716_p4 = pnand %p2715_p3, %p2709_p0 }
   0xd   :  { %2719 = shalt.err (!%p2716_p4)
}
   0xe   :  { %s2831_s21 = smov 64   ;;  %s2832_s22 = smov 4  }
   0xf   :  { %39 = dma.hbm_to_vmem [thread:$0]  %s3239_s1, 4096, %s34_s19, [#allocation6], %s2831_s21, %s2831_s21, %s2832_s22  }
  0x10   :  { %s2833_s25 = smov [#allocation2]  }
  0x11   :  { %s21_s26 = sshll.u32 %s2833_s25, 4  ;;  %s22_s26 = int_to_ptr.vmem [resolvable:$true] %s21_s26 }
  0x12   :  { %s2728_s27 = scalar_lea.vmem %s22_s26, 256  ;;  %p2733_p6 = scmp.lt.s32.totalorder %s22_s26, %s22_s26 }
  0x13   :  { %p2729_p5 = scmp.ne.s32.totalorder %s22_s26, %s2728_s27  ;;  %p2734_p7 = scmp.lt.s32.totalorder %s2728_s27, %s2728_s27 }
  0x15   :  { %p2735_p8 = por %p2734_p7, %p2733_p6 }
  0x17   :  { %p2736_p9 = pnand %p2735_p8, %p2729_p5 }
  0x19   :  { %2739 = shalt.err (!%p2736_p9)
}
  0x1a   :  { %s2834_s28 = smov 128   ;;  %s2835_s29 = smov 8  }
  0x1b   :  { %27 = dma.hbm_to_vmem [thread:$0]  %s3238_s0, 256, %s22_s26, [#allocation3], %s2834_s28, %s2834_s28, %s2835_s29  }
  0x1c   :  { %s2836_s1 = smov [#allocation7]   ;;  %s2837_s8 = smov [#allocation8]  }
  0x1d   :  { %s45_s7 = sshll.u32 %s2836_s1, 4  ;;  %s57_s9 = sshll.u32 %s2837_s8, 4  ;;  %s46_s7 = int_to_ptr.vmem [resolvable:$true] %s45_s7  ;;  %s58_s9 = int_to_ptr.vmem [resolvable:$true] %s57_s9 }
  0x1e   :  { %s2748_s10 = scalar_lea.vmem %s46_s7, 512  ;;  %p2753_p11 = scmp.lt.s32.totalorder %s46_s7, %s46_s7 }
  0x1f   :  { %p2749_p10 = scmp.ne.s32.totalorder %s46_s7, %s2748_s10  ;;  %p2754_p12 = scmp.lt.s32.totalorder %s2748_s10, %s2748_s10 }
  0x21   :  { %p2755_p13 = por %p2754_p12, %p2753_p11 }
  0x23   :  { %p2756_p0 = pnand %p2755_p13, %p2749_p10 }
  0x25   :  { %2759 = shalt.err (!%p2756_p0)
}
  0x26   :  { %51 = dma.hbm_to_vmem [thread:$0]  %s3240_s2, 512, %s46_s7, [#allocation6], %s2831_s21, %s2831_s21, %s2832_s22  }
  0x27   :  { %s2768_s0 = scalar_lea.vmem %s58_s9, 384  ;;  %p2773_p2 = scmp.lt.s32.totalorder %s58_s9, %s58_s9 }
  0x28   :  { %p2769_p1 = scmp.ne.s32.totalorder %s58_s9, %s2768_s0  ;;  %p2774_p3 = scmp.lt.s32.totalorder %s2768_s0, %s2768_s0 }
  0x2a   :  { %p2775_p4 = por %p2774_p3, %p2773_p2 }
  0x2c   :  { %p2776_p5 = pnand %p2775_p4, %p2769_p1 }
  0x2e   :  { %2779 = shalt.err (!%p2776_p5)
}
  0x2f   :  { %63 = dma.hbm_to_vmem [thread:$0]  %s3241_s3, 384, %s58_s9, [#allocation9], %s2834_s28, %s2834_s28, %s2835_s29  }
  0x30   :  { %2820 = dma.done.wait [#allocation3], 256  }
  0x31   :  { %2821 = vsyncadd [#allocation3], 4294967040 }
  0x32   :  { %2822 = dma.done.wait [#allocation6], 4608  }
  0x33   :  { %2823 = vsyncadd [#allocation6], 4294962688 }
  0x34   :  { %2824 = dma.done.wait [#allocation9], 384  }
  0x35   :  { %2825 = vsyncadd [#allocation9], 4294966912  ;;  %v2838_v0 = vmov 0.0   ;;  %vm2839_vm0 = vmmov 0   ;;  %v2621_v1 = vld [vmem:[#allocation5 + $0x48] sm:$0xff]   ;;  %v2623_v3 = vld [vmem:[#allocation5 + $0x40] sm:$0xff]   ;;  %v102_v10 = vlaneseq }
  0x36   :  { %2377 = vmatprep.subr.bf16.mxu1 %v2838_v0  ;;  %2369 = vmatprep.subr.bf16.mxu0 %v2838_v0  ;;  %v2622_v2 = vld [vmem:[#allocation5 + $0x8] sm:$0xff]   ;;  %v2624_v4 = vld [vmem:[#allocation5] sm:$0xff]   ;;  %v77_v5 = vld [vmem:[#allocation2] sm:$0xff]  ;;  %vm118_vm1 = vcmask 261120   ;;  %vm405_vm2 = vcmask 1043456   ;;  %vm375_vm3 = vcmask 64512  }
  0x37   :  { %2381 = vmatprep.mubr.msk.bf16.mxu1 %vm2839_vm0, %v2838_v0  ;;  %2373 = vmatprep.mubr.msk.bf16.mxu0 %vm2839_vm0, %v2838_v0  ;;  %v78_v6 = vld [vmem:[#allocation2 + $0x8] sm:$0xff]  ;;  %v2625_v8 = vld [vmem:[#allocation5 + $0x88] sm:$0xff]   ;;  %v2626_v9 = vld [vmem:[#allocation5 + $0x80] sm:$0xff]   ;;  %v2922_v11 = vshrl.u32 %v102_v10, 7  ;;  %vm2081_vm4 = vcmask 523264   ;;  %s2840_s2 = smov [#allocation11]  }
  0x38   :  { %2378 = vmatpush3.bf16.msra.mxu1 %v2621_v1  ;;  %2370 = vmatpush3.bf16.msra.mxu0 %v2622_v2  ;;  %v2904_v7 = vpack.c.bf16 %v78_v6, %v77_v5  ;;  %v2925_v13 = vld [vmem:[#allocation8] sm:$0xff]  ;;  %v2945_v35 = vld [vmem:[#allocation8 + $0x8] sm:$0xff]  ;;  %s2195_s3 = sshll.u32 %s2840_s2, 4  ;;  %s2196_s3 = int_to_ptr.vmem [resolvable:$true] %s2195_s3 }
  0x39   :  { %2379 = vmatprep.subr.bf16.mxu1 %v2838_v0  ;;  %2371 = vmatprep.subr.bf16.mxu0 %v2838_v0  ;;  %v165_v12 = vsub.s32 4, %v2922_v11  ;;  %v2931_v15 = vsub.s32 0, %v2922_v11  ;;  %s2780_s15 = scalar_lea.vmem %s2196_s3, 256  ;;  %p2785_p7 = scmp.lt.s32.totalorder %s2196_s3, %s2196_s3 }
  0x3a   :  { %p2781_p6 = scmp.ne.s32.totalorder %s2196_s3, %s2780_s15  ;;  %p2786_p8 = scmp.lt.s32.totalorder %s2780_s15, %s2780_s15 }
  0x3b   :  { %v166_v14 = vrot.slane %v2925_v13, %v165_v12  ;;  %v105_v18 = vrot.slane %v2925_v13, %v2931_v15  ;;  %v223_v36 = vrot.slane %v2945_v35, %v2931_v15 }
  0x3c   :  { %2380 = vmatpush3.bf16.msra.mxu1 %v2623_v3  ;;  %2372 = vmatpush3.bf16.msra.mxu0 %v2624_v4  ;;  %p2787_p9 = por %p2786_p8, %p2785_p7 }
  0x3d   :  { %2393 = vmatprep.subr.bf16.mxu1 %v2838_v0  ;;  %2385 = vmatprep.subr.bf16.mxu0 %v2838_v0 }
  0x3e   :  { %p2788_p10 = pnand %p2787_p9, %p2781_p6 }
  0x3f   :  { %2382 = vmatmul.mubr.msk.bf16.vlgmr.msra.gmra.mxu1 %vm118_vm1, %v2904_v7  ;;  %2374 = vmatmul.mubr.msk.bf16.vlgmr.msra.gmra.mxu0 %vm118_vm1, %v2904_v7 }
  0x40   :  { %2395 = vmatprep.mubr.msk.bf16.mxu1 %vm2839_vm0, %v2838_v0  ;;  %2386 = vmatpush3.bf16.msra.mxu0 %v2625_v8 }
  0x41   :  { %2389 = vmatprep.mubr.msk.bf16.mxu0 %vm2839_vm0, %v2838_v0  ;;  %2387 = vmatprep.subr.bf16.mxu0 %v2838_v0 }
  0x44   :  { %2388 = vmatpush3.bf16.msra.mxu0 %v2626_v9  ;;  %v2627_v9 = vld [vmem:[#allocation5 + $0x58] sm:$0xff]  }
  0x45   :  { %2399 = vmatprep.subr.bf16.mxu0 %v2838_v0 }
  0x47   :  { %2390 = vmatmul.mubr.msk.bf16.vlgmr.msra.gmra.mxu0 %vm118_vm1, %v2904_v7 }
  0x48   :  { %2401 = vmatprep.mubr.msk.bf16.mxu0 %vm2839_vm0, %v2838_v0 }
  0xff   :  { %v213_v16 = vpop.f32.mrf.mxu1  ;;  %v156_v19 = vpop.f32.mrf.mxu0 }
 0x100   :  { %v214_v17 = vadd.f32 %v213_v16, %v166_v14  ;;  %v157_v25 = vadd.f32 %v156_v19, %v105_v18 }
 0x101   :  { %v2383_v20 = vpop.f32.mrf.mxu1  ;;  %v2375_v22 = vpop.f32.mrf.mxu0 }
 0x102   :  { %v279_v21 = vpack.c.bf16 %v214_v17, %v214_v17  ;;  %v277_v31 = vpack.c.bf16 %v157_v25, %v157_v25  ;;  %v2628_v17 = vld [vmem:[#allocation5 + $0x18] sm:$0xff]   ;;  %v2630_v20 = vld [vmem:[#allocation5 + $0x10] sm:$0xff]  }
 0x103   :  { %v216_v23 = vpop.f32.mrf.mxu1  ;;  %v159_v27 = vpop.f32.mrf.mxu0  ;;  %v2632_v22 = vld [vmem:[#allocation5 + $0x90] sm:$0xff]  }
 0x104   :  { %v287_v24 = vsel %vm118_vm1, %v279_v21, 0  ;;  %v217_v26 = vadd.f32 %v216_v23, %v166_v14  ;;  %v160_v33 = vadd.f32 %v159_v27, %v105_v18  ;;  %v2629_v18 = vld [vmem:[#allocation5 + $0x50] sm:$0xff]   ;;  %v2631_v21 = vld [vmem:[#allocation5 + $0x98] sm:$0xff]  }
 0x105   :  { %v2384_v28 = vpop.f32.mrf.mxu1  ;;  %2394 = vmatpush3.bf16.xpose.msra.mxu1 %v287_v24  ;;  %v2376_v30 = vpop.f32.mrf.mxu0  ;;  %v575_v24 = vsub.s32 5, %v2922_v11 }
 0x106   :  { %v280_v29 = vpack.c.bf16 %v217_v26, %v217_v26  ;;  %2405 = vmatprep.subr.bf16.mxu1 %v2838_v0  ;;  %v278_v34 = vpack.c.bf16 %v160_v33, %v160_v33  ;;  %v3000_v30 = vsub.s32 1, %v2922_v11 }
 0x107   :  { %v270_v37 = vpop.f32.mrf.mxu0 }
 0x108   :  { %v333_v32 = vsel %vm118_vm1, %v280_v29, 0  ;;  %v271_v38 = vadd.f32 %v270_v37, %v223_v36  ;;  %v576_v29 = vrot.slane %v2925_v13, %v575_v24  ;;  %v519_v37 = vrot.slane %v2925_v13, %v3000_v30 }
 0x109   :  { %2400 = vmatpush3.bf16.xpose.msra.mxu0 %v333_v32  ;;  %v2391_v39 = vpop.f32.mrf.mxu0 }
 0x10a   :  { %2411 = vmatprep.subr.bf16.mxu0 %v2838_v0  ;;  %v281_v40 = vpack.c.bf16 %v271_v38, %v271_v38 }
 0x10b   :  { %v273_v41 = vpop.f32.mrf.mxu0 }
 0x10c   :  { %2396 = vmatmul.mubr.msk.bf16.vlgmr.msra.gmra.mxu1 %vm118_vm1, %v277_v31  ;;  %v407_v42 = vsel %vm405_vm2, %v281_v40, 0  ;;  %v274_v43 = vadd.f32 %v273_v41, %v223_v36 }
 0x10d   :  { %2407 = vmatprep.mubr.msk.bf16.mxu1 %vm2839_vm0, %v2838_v0  ;;  %v2392_v44 = vpop.f32.mrf.mxu0  ;;  %2406 = vmatpush3.bf16.msra.mxu1 %v407_v42 }
 0x10e   :  { %v282_v45 = vpack.c.bf16 %v274_v43, %v274_v43  ;;  %2417 = vmatprep.subr.bf16.mxu1 %v2838_v0 }
 0x110   :  { %2402 = vmatmul.mubr.msk.bf16.vlgmr.msra.gmra.mxu0 %vm118_vm1, %v278_v34  ;;  %v453_v46 = vsel %vm405_vm2, %v282_v45, 0 }
 0x111   :  { %2413 = vmatprep.mubr.msk.bf16.mxu0 %vm2839_vm0, %v2838_v0  ;;  %2412 = vmatpush3.bf16.msra.mxu0 %v453_v46 }
 0x112   :  { %2425 = vmatprep.subr.bf16.mxu0 %v2838_v0 }
 0x1cc   :  { %v323_v47 = vpop.f32.mrf.mxu1 }
 0x1cd   :  { %v376_v55 = vsel %vm375_vm3, %v323_v47, -inf }
 0x1ce   :  { %v2397_v48 = vpop.f32.mrf.mxu1 }
 0x1d0   :  { %v326_v49 = vpop.f32.mrf.mxu1  ;;  %v369_v50 = vpop.f32.mrf.mxu0 }
 0x1d1   :  { %v379_v51 = vsel %vm375_vm3, %v369_v50, -inf }
 0x1d2   :  { %v2398_v52 = vpop.f32.mrf.mxu1  ;;  %380 = vmax.xlane.f32.xlu0 %v379_v51  ;;  %v2403_v53 = vpop.f32.mrf.mxu0 }
 0x1d4   :  { %v372_v54 = vpop.f32.mrf.mxu0 }
 0x1d6   :  { %377 = vmax.xlane.f32.xlu0 %v376_v55  ;;  %v2404_v56 = vpop.f32.mrf.mxu0  ;;  %v633_v55 = vrot.slane %v2945_v35, %v3000_v30 }
 0x25b   :  { %v381_v57 = vpop.xlane.xlu0 %380 }
 0x25c   :  { %v383_v58 = vsub.f32 %v369_v50, %v381_v57 }
 0x25e   :  { %v386_v59 = vmul.f32 1.442695, %v383_v58 }
 0x25f   :  { %v378_v60 = vpop.xlane.xlu0 %377 }
 0x260   :  { %2657 = vpow2.f32 %v386_v59  ;;  %v382_v61 = vsub.f32 %v323_v47, %v378_v60 }
 0x262   :  { %v384_v62 = vmul.f32 1.442695, %v382_v61 }
 0x264   :  { %2659 = vpow2.f32 %v384_v62 }
 0x26d   :  { %v2658_v63 = vpop.eup %2657 }
 0x26e   :  { %v391_v1 = vsel %vm375_vm3, %v2658_v63, 0.0 }
 0x26f   :  { %392 = vadd.xlane.f32.xlu1 %v391_v1 }
 0x271   :  { %v2660_v2 = vpop.eup %2659 }
 0x272   :  { %v388_v3 = vsel %vm375_vm3, %v2660_v2, 0.0 }
 0x273   :  { %389 = vadd.xlane.f32.xlu1 %v388_v3 }
 0x2f8   :  { %v393_v4 = vpop.xlane.xlu1 %392 }
 0x2f9   :  { %2661 = vrcp.f32 %v393_v4 }
 0x2fc   :  { %v390_v5 = vpop.xlane.xlu1 %389 }
 0x2fd   :  { %2663 = vrcp.f32 %v390_v5 }
 0x306   :  { %v2662_v6 = vpop.eup %2661 }
 0x307   :  { %v2957_v8 = vmul.f32 %v2662_v6, %v2658_v63 }
 0x309   :  { %v401_v10 = vpack.c.bf16 %v2957_v8, %v2957_v8 }
 0x30a   :  { %v2664_v14 = vpop.eup %2663 }
 0x30b   :  { %2414 = vmatmul.mubr.msk.bf16.vlgmr.msra.gmra.mxu0 %vm375_vm3, %v401_v10  ;;  %v2962_v16 = vmul.f32 %v2664_v14, %v2660_v2 }
 0x30c   :  { %2426 = vmatpush3.bf16.msra.mxu0 %v2627_v9  ;;  %2429 = vmatprep.mubr.msk.bf16.mxu0 %vm2839_vm0, %v2838_v0 }
 0x30d   :  { %v400_v19 = vpack.c.bf16 %v2962_v16, %v2962_v16  ;;  %2427 = vmatprep.subr.bf16.mxu0 %v2838_v0 }
 0x30f   :  { %2408 = vmatmul.mubr.msk.bf16.vlgmr.msra.gmra.mxu1 %vm375_vm3, %v400_v19 }
 0x310   :  { %2418 = vmatpush3.bf16.msra.mxu1 %v2628_v17  ;;  %2428 = vmatpush3.bf16.msra.mxu0 %v2629_v18 }
 0x311   :  { %2419 = vmatprep.subr.bf16.mxu1 %v2838_v0  ;;  %2421 = vmatprep.mubr.msk.bf16.mxu1 %vm2839_vm0, %v2838_v0 }
 0x312   :  { %2441 = vmatprep.subr.bf16.mxu0 %v2838_v0 }
 0x313   :  { %2430 = vmatmul.mubr.msk.bf16.vlgmr.msra.gmra.mxu0 %vm118_vm1, %v2904_v7 }
 0x314   :  { %2420 = vmatpush3.bf16.msra.mxu1 %v2630_v20  ;;  %2443 = vmatprep.mubr.msk.bf16.mxu0 %vm2839_vm0, %v2838_v0 }
 0x315   :  { %2433 = vmatprep.subr.bf16.mxu1 %v2838_v0 }
 0x317   :  { %2422 = vmatmul.mubr.msk.bf16.vlgmr.msra.gmra.mxu1 %vm118_vm1, %v2904_v7 }
 0x318   :  { %2437 = vmatprep.mubr.msk.bf16.mxu1 %vm2839_vm0, %v2838_v0  ;;  %2434 = vmatpush3.bf16.msra.mxu1 %v2631_v21 }
 0x319   :  { %2435 = vmatprep.subr.bf16.mxu1 %v2838_v0 }
 0x31c   :  { %2436 = vmatpush3.bf16.msra.mxu1 %v2632_v22 }
 0x31d   :  { %2447 = vmatprep.subr.bf16.mxu1 %v2838_v0 }
 0x31f   :  { %2438 = vmatmul.mubr.msk.bf16.vlgmr.msra.gmra.mxu1 %vm118_vm1, %v2904_v7 }
 0x320   :  { %2449 = vmatprep.mubr.msk.bf16.mxu1 %vm2839_vm0, %v2838_v0 }
 0x3cb   :  { %v2989_v23 = vpop.f32.mrf.mxu0 }
 0x3cd   :  { %v2415_v25 = vpop.f32.mrf.mxu0 }
 0x3cf   :  { %v2992_v26 = vpop.f32.mrf.mxu1  ;;  %v492_v27 = vpop.f32.mrf.mxu0 }
 0x3d0   :  { %v495_v28 = vpack.c.bf16 %v2989_v23, %v2992_v26  ;;  %v2638_v23 = vld [vmem:[#allocation5 + $0xd0] sm:$0xff]  }
 0x3d1   :  { %v2409_v31 = vpop.f32.mrf.mxu1  ;;  %v2416_v32 = vpop.f32.mrf.mxu0 }
 0x3d3   :  { %v446_v33 = vpop.f32.mrf.mxu1  ;;  %v623_v34 = vpop.f32.mrf.mxu0 }
 0x3d4   :  { %v624_v36 = vadd.f32 %v623_v34, %v576_v29 }
 0x3d5   :  { %v2410_v38 = vpop.f32.mrf.mxu1  ;;  %v2431_v39 = vpop.f32.mrf.mxu0 }
 0x3d6   :  { %v689_v40 = vpack.c.bf16 %v624_v36, %v624_v36 }
 0x3d7   :  { %v566_v41 = vpop.f32.mrf.mxu1  ;;  %v626_v42 = vpop.f32.mrf.mxu0 }
 0x3d8   :  { %v697_v43 = vsel %vm118_vm1, %v689_v40, 0  ;;  %v567_v44 = vadd.f32 %v566_v41, %v519_v37  ;;  %v627_v45 = vadd.f32 %v626_v42, %v576_v29 }
 0x3d9   :  { %v2423_v46 = vpop.f32.mrf.mxu1  ;;  %v2432_v47 = vpop.f32.mrf.mxu0  ;;  %2442 = vmatpush3.bf16.xpose.msra.mxu0 %v697_v43  ;;  %v2633_v43 = vld [vmem:[#allocation5 + $0xc8] sm:$0xff]  }
 0x3da   :  { %v690_v48 = vpack.c.bf16 %v627_v45, %v627_v45  ;;  %2453 = vmatprep.subr.bf16.mxu0 %v2838_v0  ;;  %v687_v50 = vpack.c.bf16 %v567_v44, %v567_v44  ;;  %v2634_v45 = vld [vmem:[#allocation5 + $0xc0] sm:$0xff]   ;;  %v2635_v46 = vld [vmem:[#allocation5 + $0x68] sm:$0xff]  }
 0x3db   :  { %v569_v49 = vpop.f32.mrf.mxu1  ;;  %v2636_v47 = vld [vmem:[#allocation5 + $0x60] sm:$0xff]  }
 0x3dc   :  { %v743_v51 = vsel %vm118_vm1, %v690_v48, 0  ;;  %v570_v53 = vadd.f32 %v569_v49, %v519_v37  ;;  %v2637_v48 = vld [vmem:[#allocation5 + $0xd8] sm:$0xff]  }
 0x3dd   :  { %v2424_v52 = vpop.f32.mrf.mxu1  ;;  %2448 = vmatpush3.bf16.xpose.msra.mxu1 %v743_v51  ;;  %v2639_v51 = vld [vmem:[#allocation5 + $0x28] sm:$0xff]  }
 0x3de   :  { %2459 = vmatprep.subr.bf16.mxu1 %v2838_v0  ;;  %v688_v54 = vpack.c.bf16 %v570_v53, %v570_v53 }
 0x3df   :  { %v680_v56 = vpop.f32.mrf.mxu1 }
 0x3e0   :  { %2444 = vmatmul.mubr.msk.bf16.vlgmr.msra.gmra.mxu0 %vm118_vm1, %v687_v50  ;;  %v681_v57 = vadd.f32 %v680_v56, %v633_v55  ;;  %v2640_v56 = vld [vmem:[#allocation5 + $0x20] sm:$0xff]  }
 0x3e1   :  { %2455 = vmatprep.mubr.msk.bf16.mxu0 %vm2839_vm0, %v2838_v0  ;;  %v2439_v58 = vpop.f32.mrf.mxu1 }
 0x3e2   :  { %v691_v59 = vpack.c.bf16 %v681_v57, %v681_v57 }
 0x3e3   :  { %v683_v60 = vpop.f32.mrf.mxu1 }
 0x3e4   :  { %2450 = vmatmul.mubr.msk.bf16.vlgmr.msra.gmra.mxu1 %vm118_vm1, %v688_v54  ;;  %v815_v61 = vsel %vm405_vm2, %v691_v59, 0  ;;  %v684_v62 = vadd.f32 %v683_v60, %v633_v55  ;;  %v2641_v59 = vld [vmem:[#allocation5 + $0xa8] sm:$0xff]   ;;  %v1095_v60 = vsub.s32 6, %v2922_v11 }
 0x3e5   :  { %2461 = vmatprep.mubr.msk.bf16.mxu1 %vm2839_vm0, %v2838_v0  ;;  %v2440_v63 = vpop.f32.mrf.mxu1  ;;  %2454 = vmatpush3.bf16.msra.mxu0 %v815_v61 }
 0x3e6   :  { %v692_v1 = vpack.c.bf16 %v684_v62, %v684_v62  ;;  %2465 = vmatprep.subr.bf16.mxu0 %v2838_v0  ;;  %v1096_v63 = vrot.slane %v2925_v13, %v1095_v60 }
 0x3e8   :  { %v861_v2 = vsel %vm405_vm2, %v692_v1, 0 }
 0x3e9   :  { %2460 = vmatpush3.bf16.msra.mxu1 %v861_v2 }
 0x3ea   :  { %2473 = vmatprep.subr.bf16.mxu1 %v2838_v0 }
 0x4a0   :  { %v733_v3 = vpop.f32.mrf.mxu0 }
 0x4a1   :  { %v785_v4 = vsel %vm375_vm3, %v733_v3, -inf }
 0x4a2   :  { %786 = vmax.xlane.f32.xlu0 %v785_v4  ;;  %v2445_v5 = vpop.f32.mrf.mxu0 }
 0x4a4   :  { %v736_v6 = vpop.f32.mrf.mxu0  ;;  %v779_v9 = vpop.f32.mrf.mxu1 }
 0x4a5   :  { %v788_v10 = vsel %vm375_vm3, %v779_v9, -inf }
 0x4a6   :  { %789 = vmax.xlane.f32.xlu1 %v788_v10  ;;  %v2446_v14 = vpop.f32.mrf.mxu0  ;;  %v2451_v17 = vpop.f32.mrf.mxu1 }
 0x4a8   :  { %v782_v18 = vpop.f32.mrf.mxu1 }
 0x4a9   :  { %v2642_v18 = vld [vmem:[#allocation5 + $0xa0] sm:$0xff]  }
 0x4aa   :  { %v2452_v19 = vpop.f32.mrf.mxu1 }
 0x52b   :  { %v787_v20 = vpop.xlane.xlu0 %786 }
 0x52c   :  { %v791_v21 = vsub.f32 %v733_v3, %v787_v20 }
 0x52e   :  { %v793_v22 = vmul.f32 1.442695, %v791_v21  ;;  %v3084_v21 = vsub.s32 2, %v2922_v11 }
 0x52f   :  { %v790_v25 = vpop.xlane.xlu1 %789 }
 0x530   :  { %2665 = vpow2.f32 %v793_v22  ;;  %v792_v27 = vsub.f32 %v779_v9, %v790_v25 }
 0x532   :  { %v795_v29 = vmul.f32 1.442695, %v792_v27  ;;  %v1039_v27 = vrot.slane %v2925_v13, %v3084_v21 }
 0x534   :  { %2667 = vpow2.f32 %v795_v29 }
 0x53d   :  { %v2666_v31 = vpop.eup %2665 }
 0x53e   :  { %v797_v32 = vsel %vm375_vm3, %v2666_v31, 0.0 }
 0x53f   :  { %798 = vadd.xlane.f32.xlu0 %v797_v32 }
 0x541   :  { %v2668_v33 = vpop.eup %2667 }
 0x542   :  { %v800_v34 = vsel %vm375_vm3, %v2668_v33, 0.0 }
 0x543   :  { %801 = vadd.xlane.f32.xlu1 %v800_v34 }
 0x5c8   :  { %v799_v36 = vpop.xlane.xlu0 %798 }
 0x5c9   :  { %2669 = vrcp.f32 %v799_v36 }
 0x5cc   :  { %v802_v37 = vpop.xlane.xlu1 %801 }
 0x5cd   :  { %2671 = vrcp.f32 %v802_v37 }
 0x5d6   :  { %v2670_v38 = vpop.eup %2669 }
 0x5d7   :  { %v3024_v39 = vmul.f32 %v2670_v38, %v2666_v31 }
 0x5d9   :  { %v809_v40 = vpack.c.bf16 %v3024_v39, %v3024_v39 }
 0x5da   :  { %v2672_v41 = vpop.eup %2671 }
 0x5db   :  { %2456 = vmatmul.mubr.msk.bf16.vlgmr.msra.gmra.mxu0 %vm375_vm3, %v809_v40  ;;  %v3029_v42 = vmul.f32 %v2672_v41, %v2668_v33  ;;  %v1153_v41 = vrot.slane %v2945_v35, %v3084_v21 }
 0x5dc   :  { %2469 = vmatprep.mubr.msk.bf16.mxu0 %vm2839_vm0, %v2838_v0  ;;  %2466 = vmatpush3.bf16.msra.mxu0 %v2637_v48 }
 0x5dd   :  { %v810_v44 = vpack.c.bf16 %v3029_v42, %v3029_v42  ;;  %2467 = vmatprep.subr.bf16.mxu0 %v2838_v0 }
 0x5df   :  { %2462 = vmatmul.mubr.msk.bf16.vlgmr.msra.gmra.mxu1 %vm375_vm3, %v810_v44 }
 0x5e0   :  { %2474 = vmatpush3.bf16.msra.mxu1 %v2633_v43  ;;  %2477 = vmatprep.mubr.msk.bf16.mxu1 %vm2839_vm0, %v2838_v0 }
 0x5e1   :  { %2475 = vmatprep.subr.bf16.mxu1 %v2838_v0  ;;  %2468 = vmatpush3.bf16.msra.mxu0 %v2638_v23 }
 0x5e2   :  { %2481 = vmatprep.subr.bf16.mxu0 %v2838_v0 }
 0x5e4   :  { %2476 = vmatpush3.bf16.msra.mxu1 %v2634_v45 }
 0x5e5   :  { %2489 = vmatprep.subr.bf16.mxu1 %v2838_v0 }
 0x5e7   :  { %2478 = vmatmul.mubr.msk.bf16.vlgmr.msra.gmra.mxu1 %vm118_vm1, %v495_v28 }
 0x5e8   :  { %2490 = vmatpush3.bf16.msra.mxu1 %v2635_v46  ;;  %2493 = vmatprep.mubr.msk.bf16.mxu1 %vm2839_vm0, %v2838_v0 }
 0x5e9   :  { %2491 = vmatprep.subr.bf16.mxu1 %v2838_v0 }
 0x5ec   :  { %2492 = vmatpush3.bf16.msra.mxu1 %v2636_v47 }
 0x5ed   :  { %2505 = vmatprep.subr.bf16.mxu1 %v2838_v0 }
 0x5ef   :  { %2494 = vmatmul.mubr.msk.bf16.vlgmr.msra.gmra.mxu1 %vm118_vm1, %v2904_v7 }
 0x5f0   :  { %2507 = vmatprep.mubr.msk.bf16.mxu1 %vm2839_vm0, %v2838_v0 }
 0x69b   :  { %v851_v26 = vpop.f32.mrf.mxu0 }
 0x69d   :  { %v2457_v28 = vpop.f32.mrf.mxu0 }
 0x69f   :  { %v854_v49 = vpop.f32.mrf.mxu0  ;;  %v897_v50 = vpop.f32.mrf.mxu1 }
 0x6a0   :  { %v903_v52 = vpack.c.bf16 %v897_v50, %v851_v26 }
 0x6a1   :  { %v2458_v53 = vpop.f32.mrf.mxu0  ;;  %v2463_v54 = vpop.f32.mrf.mxu1 }
 0x6a2   :  { %2470 = vmatmul.mubr.msk.bf16.vlgmr.msra.gmra.mxu0 %vm118_vm1, %v903_v52 }
 0x6a3   :  { %v900_v55 = vpop.f32.mrf.mxu1  ;;  %2482 = vmatpush3.bf16.msra.mxu0 %v2639_v51  ;;  %2485 = vmatprep.mubr.msk.bf16.mxu0 %vm2839_vm0, %v2838_v0 }
 0x6a4   :  { %2483 = vmatprep.subr.bf16.mxu0 %v2838_v0 }
 0x6a5   :  { %v2464_v57 = vpop.f32.mrf.mxu1 }
 0x6a7   :  { %v3058_v58 = vpop.f32.mrf.mxu1  ;;  %2484 = vmatpush3.bf16.msra.mxu0 %v2640_v56 }
 0x6a8   :  { %2497 = vmatprep.subr.bf16.mxu0 %v2838_v0 }
 0x6a9   :  { %v2479_v61 = vpop.f32.mrf.mxu1 }
 0x6aa   :  { %2486 = vmatmul.mubr.msk.bf16.vlgmr.msra.gmra.mxu0 %vm118_vm1, %v2904_v7 }
 0x6ab   :  { %v3064_v62 = vpop.f32.mrf.mxu1  ;;  %2498 = vmatpush3.bf16.msra.mxu0 %v2641_v59  ;;  %2501 = vmatprep.mubr.msk.bf16.mxu0 %vm2839_vm0, %v2838_v0 }
 0x6ac   :  { %2499 = vmatprep.subr.bf16.mxu0 %v2838_v0 }
 0x6ad   :  { %v2480_v1 = vpop.f32.mrf.mxu1 }
 0x6af   :  { %v1143_v2 = vpop.f32.mrf.mxu1  ;;  %2500 = vmatpush3.bf16.msra.mxu0 %v2642_v18 }
 0x6b0   :  { %v1144_v3 = vadd.f32 %v1143_v2, %v1096_v63  ;;  %2511 = vmatprep.subr.bf16.mxu0 %v2838_v0 }
 0x6b1   :  { %v2495_v4 = vpop.f32.mrf.mxu1 }
 0x6b2   :  { %v1209_v5 = vpack.c.bf16 %v1144_v3, %v1144_v3  ;;  %2502 = vmatmul.mubr.msk.bf16.vlgmr.msra.gmra.mxu0 %vm118_vm1, %v2904_v7 }
 0x6b3   :  { %v1146_v6 = vpop.f32.mrf.mxu1  ;;  %2513 = vmatprep.mubr.msk.bf16.mxu0 %vm2839_vm0, %v2838_v0 }
 0x6b4   :  { %v1217_v9 = vsel %vm118_vm1, %v1209_v5, 0  ;;  %v1147_v14 = vadd.f32 %v1146_v6, %v1096_v63 }
 0x6b5   :  { %v2496_v10 = vpop.f32.mrf.mxu1  ;;  %2506 = vmatpush3.bf16.xpose.msra.mxu1 %v1217_v9 }
 0x6b6   :  { %2517 = vmatprep.subr.bf16.mxu1 %v2838_v0  ;;  %v1210_v17 = vpack.c.bf16 %v1147_v14, %v1147_v14 }
 0x6b8   :  { %v1263_v19 = vsel %vm118_vm1, %v1210_v17, 0 }
 0x6b9   :  { %2512 = vmatpush3.bf16.xpose.msra.mxu0 %v1263_v19 }
 0x6ba   :  { %2523 = vmatprep.subr.bf16.mxu0 %v2838_v0 }
 0x762   :  { %v3081_v20 = vpop.f32.mrf.mxu0 }
 0x764   :  { %v2471_v22 = vpop.f32.mrf.mxu0 }
 0x766   :  { %v3086_v25 = vpop.f32.mrf.mxu0 }
 0x768   :  { %v2472_v29 = vpop.f32.mrf.mxu0 }
 0x76a   :  { %v1086_v31 = vpop.f32.mrf.mxu0 }
 0x76b   :  { %v1087_v32 = vadd.f32 %v1086_v31, %v1039_v27 }
 0x76c   :  { %v2487_v33 = vpop.f32.mrf.mxu0 }
 0x76d   :  { %v1207_v34 = vpack.c.bf16 %v1087_v32, %v1087_v32 }
 0x76e   :  { %v1089_v36 = vpop.f32.mrf.mxu0 }
 0x76f   :  { %v1090_v37 = vadd.f32 %v1089_v36, %v1039_v27  ;;  %2508 = vmatmul.mubr.msk.bf16.vlgmr.msra.gmra.mxu1 %vm118_vm1, %v1207_v34  ;;  %v807_v27 = vadd.f32 %v3024_v39, %v2962_v16  ;;  %v808_v34 = vadd.f32 %v3029_v42, %v2957_v8  ;;  %v2643_v16 = vld [vmem:[#allocation5 + $0xe8] sm:$0xff]   ;;  %v2644_v39 = vld [vmem:[#allocation5 + $0xe0] sm:$0xff]   ;;  %v2646_v8 = vld [vmem:[#allocation5 + $0x38] sm:$0xff]  }
 0x770   :  { %v2488_v38 = vpop.f32.mrf.mxu0  ;;  %2519 = vmatprep.mubr.msk.bf16.mxu1 %vm2839_vm0, %v2838_v0  ;;  %v2648_v42 = vld [vmem:[#allocation5 + $0x30] sm:$0xff]  }
 0x771   :  { %v1208_v40 = vpack.c.bf16 %v1090_v37, %v1090_v37 }
 0x772   :  { %v1200_v43 = vpop.f32.mrf.mxu0 }
 0x773   :  { %2514 = vmatmul.mubr.msk.bf16.vlgmr.msra.gmra.mxu0 %vm118_vm1, %v1208_v40  ;;  %v1201_v44 = vadd.f32 %v1200_v43, %v1153_v41 }
 0x774   :  { %2525 = vmatprep.mubr.msk.bf16.mxu0 %vm2839_vm0, %v2838_v0  ;;  %v2503_v45 = vpop.f32.mrf.mxu0 }
 0x775   :  { %v1211_v46 = vpack.c.bf16 %v1201_v44, %v1201_v44  ;;  %v2645_v44 = vld [vmem:[#allocation5 + $0x78] sm:$0xff]  }
 0x776   :  { %v1203_v47 = vpop.f32.mrf.mxu0 }
 0x777   :  { %v1335_v48 = vsel %vm405_vm2, %v1211_v46, 0  ;;  %v1204_v23 = vadd.f32 %v1203_v47, %v1153_v41 }
 0x778   :  { %v2504_v26 = vpop.f32.mrf.mxu0  ;;  %2518 = vmatpush3.bf16.msra.mxu1 %v1335_v48 }
 0x779   :  { %v1212_v28 = vpack.c.bf16 %v1204_v23, %v1204_v23  ;;  %2529 = vmatprep.subr.bf16.mxu1 %v2838_v0  ;;  %v2647_v23 = vld [vmem:[#allocation5 + $0x70] sm:$0xff]  }
 0x77b   :  { %v1381_v49 = vsel %vm405_vm2, %v1212_v28, 0  ;;  %v2649_v28 = vld [vmem:[#allocation5 + $0xb8] sm:$0xff]  }
 0x77c   :  { %2524 = vmatpush3.bf16.msra.mxu0 %v1381_v49  ;;  %v2650_v49 = vld [vmem:[#allocation5 + $0xb0] sm:$0xff]  }
 0x77d   :  { %2537 = vmatprep.subr.bf16.mxu0 %v2838_v0 }
 0x82f   :  { %v1253_v50 = vpop.f32.mrf.mxu1 }
 0x830   :  { %v1305_v51 = vsel %vm375_vm3, %v1253_v50, -inf }
 0x831   :  { %1306 = vmax.xlane.f32.xlu0 %v1305_v51  ;;  %v2509_v52 = vpop.f32.mrf.mxu1 }
 0x833   :  { %v1256_v53 = vpop.f32.mrf.mxu1  ;;  %v1299_v54 = vpop.f32.mrf.mxu0 }
 0x834   :  { %v1308_v55 = vsel %vm375_vm3, %v1299_v54, -inf }
 0x835   :  { %v2510_v56 = vpop.f32.mrf.mxu1  ;;  %1309 = vmax.xlane.f32.xlu1 %v1308_v55  ;;  %v2515_v57 = vpop.f32.mrf.mxu0 }
 0x836   :  { %v1561_v57 = vsub.s32 7, %v2922_v11 }
 0x837   :  { %v1302_v59 = vpop.f32.mrf.mxu0 }
 0x839   :  { %v2516_v61 = vpop.f32.mrf.mxu0 }
 0x83a   :  { %v1013_v61 = vadd.f32 %v3064_v62, %v3086_v25 }
 0x8ba   :  { %v1307_v63 = vpop.xlane.xlu0 %1306 }
 0x8bb   :  { %v1311_v1 = vsub.f32 %v1253_v50, %v1307_v63 }
 0x8bd   :  { %v1313_v2 = vmul.f32 1.442695, %v1311_v1  ;;  %v1562_v1 = vrot.slane %v2925_v13, %v1561_v57 }
 0x8be   :  { %v1310_v3 = vpop.xlane.xlu1 %1309 }
 0x8bf   :  { %2673 = vpow2.f32 %v1313_v2  ;;  %v1312_v4 = vsub.f32 %v1299_v54, %v1310_v3  ;;  %v1010_v54 = vadd.f32 %v3058_v58, %v3081_v20  ;;  %v1504_v2 = vsub.s32 3, %v2922_v11 }
 0x8c1   :  { %v1315_v5 = vmul.f32 1.442695, %v1312_v4  ;;  %v1505_v4 = vrot.slane %v2925_v13, %v1504_v2 }
 0x8c3   :  { %2675 = vpow2.f32 %v1315_v5 }
 0x8cc   :  { %v2674_v6 = vpop.eup %2673 }
 0x8cd   :  { %v1317_v9 = vsel %vm375_vm3, %v2674_v6, 0.0 }
 0x8ce   :  { %1318 = vadd.xlane.f32.xlu0 %v1317_v9 }
 0x8d0   :  { %v2676_v10 = vpop.eup %2675 }
 0x8d1   :  { %v1320_v14 = vsel %vm375_vm3, %v2676_v10, 0.0 }
 0x8d2   :  { %1321 = vadd.xlane.f32.xlu1 %v1320_v14 }
 0x957   :  { %v1319_v17 = vpop.xlane.xlu0 %1318 }
 0x958   :  { %2677 = vrcp.f32 %v1319_v17 }
 0x95b   :  { %v1322_v18 = vpop.xlane.xlu1 %1321 }
 0x95c   :  { %2679 = vrcp.f32 %v1322_v18 }
 0x965   :  { %v2678_v19 = vpop.eup %2677 }
 0x966   :  { %v1325_v22 = vmul.f32 %v2678_v19, %v2674_v6 }
 0x968   :  { %v1329_v29 = vpack.c.bf16 %v1325_v22, %v1325_v22  ;;  %v3108_v31 = vadd.f32 %v1325_v22, %v807_v27  ;;  %v1619_v27 = vrot.slane %v2945_v35, %v1504_v2 }
 0x969   :  { %v2680_v32 = vpop.eup %2679 }
 0x96a   :  { %2520 = vmatmul.mubr.msk.bf16.vlgmr.msra.gmra.mxu1 %vm375_vm3, %v1329_v29  ;;  %v1326_v33 = vmul.f32 %v2680_v32, %v2676_v10 }
 0x96b   :  { %2533 = vmatprep.mubr.msk.bf16.mxu1 %vm2839_vm0, %v2838_v0  ;;  %2530 = vmatpush3.bf16.msra.mxu1 %v2643_v16 }
 0x96c   :  { %v1330_v36 = vpack.c.bf16 %v1326_v33, %v1326_v33  ;;  %v3115_v37 = vadd.f32 %v1326_v33, %v808_v34  ;;  %2531 = vmatprep.subr.bf16.mxu1 %v2838_v0 }
 0x96e   :  { %2526 = vmatmul.mubr.msk.bf16.vlgmr.msra.gmra.mxu0 %vm375_vm3, %v1330_v36 }
 0x96f   :  { %2541 = vmatprep.mubr.msk.bf16.mxu0 %vm2839_vm0, %v2838_v0  ;;  %2532 = vmatpush3.bf16.msra.mxu1 %v2644_v39 }
 0x970   :  { %2545 = vmatprep.subr.bf16.mxu1 %v2838_v0  ;;  %2538 = vmatpush3.bf16.msra.mxu0 %v2646_v8 }
 0x971   :  { %2539 = vmatprep.subr.bf16.mxu0 %v2838_v0 }
 0x974   :  { %2540 = vmatpush3.bf16.msra.mxu0 %v2648_v42 }
 0x975   :  { %2553 = vmatprep.subr.bf16.mxu0 %v2838_v0 }
 0x977   :  { %2542 = vmatmul.mubr.msk.bf16.vlgmr.msra.gmra.mxu0 %vm118_vm1, %v2904_v7 }
 0x978   :  { %2557 = vmatprep.mubr.msk.bf16.mxu0 %vm2839_vm0, %v2838_v0  ;;  %2554 = vmatpush3.bf16.msra.mxu0 %v2649_v28 }
 0x979   :  { %2555 = vmatprep.subr.bf16.mxu0 %v2838_v0 }
 0x97c   :  { %2556 = vmatpush3.bf16.msra.mxu0 %v2650_v49 }
 0x97d   :  { %2567 = vmatprep.subr.bf16.mxu0 %v2838_v0 }
 0x97f   :  { %2558 = vmatmul.mubr.msk.bf16.vlgmr.msra.gmra.mxu0 %vm118_vm1, %v2904_v7 }
 0x980   :  { %2569 = vmatprep.mubr.msk.bf16.mxu0 %vm2839_vm0, %v2838_v0 }
 0xa2a   :  { %v1371_v38 = vpop.f32.mrf.mxu1 }
 0xa2c   :  { %v2521_v40 = vpop.f32.mrf.mxu1 }
 0xa2e   :  { %v1374_v41 = vpop.f32.mrf.mxu1  ;;  %v1417_v43 = vpop.f32.mrf.mxu0 }
 0xa2f   :  { %v1423_v45 = vpack.c.bf16 %v1417_v43, %v1371_v38 }
 0xa30   :  { %v2522_v46 = vpop.f32.mrf.mxu1  ;;  %v2527_v47 = vpop.f32.mrf.mxu0 }
 0xa31   :  { %2534 = vmatmul.mubr.msk.bf16.vlgmr.msra.gmra.mxu1 %vm118_vm1, %v1423_v45 }
 0xa32   :  { %v1420_v48 = vpop.f32.mrf.mxu0  ;;  %2546 = vmatpush3.bf16.msra.mxu1 %v2645_v44  ;;  %2549 = vmatprep.mubr.msk.bf16.mxu1 %vm2839_vm0, %v2838_v0 }
 0xa33   :  { %2547 = vmatprep.subr.bf16.mxu1 %v2838_v0 }
 0xa34   :  { %v2528_v26 = vpop.f32.mrf.mxu0 }
 0xa36   :  { %2548 = vmatpush3.bf16.msra.mxu1 %v2647_v23 }
 0xa37   :  { %2561 = vmatprep.subr.bf16.mxu1 %v2838_v0  ;;  %v1552_v50 = vpop.f32.mrf.mxu0 }
 0xa38   :  { %v1553_v62 = vadd.f32 %v1552_v50, %v1505_v4 }
 0xa39   :  { %2550 = vmatmul.mubr.msk.bf16.vlgmr.msra.gmra.mxu1 %vm118_vm1, %v2904_v7  ;;  %v2543_v51 = vpop.f32.mrf.mxu0 }
 0xa3a   :  { %2563 = vmatprep.mubr.msk.bf16.mxu1 %vm2839_vm0, %v2838_v0  ;;  %v1673_v18 = vpack.c.bf16 %v1553_v62, %v1553_v62 }
 0xa3b   :  { %v1555_v52 = vpop.f32.mrf.mxu0 }
 0xa3c   :  { %v1556_v22 = vadd.f32 %v1555_v52, %v1505_v4 }
 0xa3d   :  { %v2544_v53 = vpop.f32.mrf.mxu0 }
 0xa3e   :  { %v1674_v13 = vpack.c.bf16 %v1556_v22, %v1556_v22 }
 0xa3f   :  { %v1666_v29 = vpop.f32.mrf.mxu0 }
 0xa40   :  { %v1667_v32 = vadd.f32 %v1666_v29, %v1619_v27 }
 0xa41   :  { %v2559_v33 = vpop.f32.mrf.mxu0 }
 0xa42   :  { %v1677_v34 = vpack.c.bf16 %v1667_v32, %v1667_v32  ;;  %v1951_v32 = vrot.slane %v2945_v35, %v165_v12 }
 0xa43   :  { %v1669_v36 = vpop.f32.mrf.mxu0 }
 0xa44   :  { %v1801_v16 = vsel %vm405_vm2, %v1677_v34, 0  ;;  %v1670_v39 = vadd.f32 %v1669_v36, %v1619_v27 }
 0xa45   :  { %v2560_v8 = vpop.f32.mrf.mxu0 }
 0xa46   :  { %v1678_v42 = vpack.c.bf16 %v1670_v39, %v1670_v39 }
 0xa48   :  { %v1847_v38 = vsel %vm405_vm2, %v1678_v42, 0  ;;  %v2697_v42 = vld [vmem:[#allocation2] sm:$0xff] }
 0xaf1   :  { %v1473_v55 = vpop.f32.mrf.mxu1 }
 0xaf2   :  { %v3145_v56 = vadd.f32 %v1473_v55, %v1010_v54 }
 0xaf3   :  { %v2535_v59 = vpop.f32.mrf.mxu1 }
 0xaf5   :  { %v1476_v63 = vpop.f32.mrf.mxu1 }
 0xaf6   :  { %v3150_v7 = vadd.f32 %v1476_v63, %v1013_v61 }
 0xaf7   :  { %v2536_v3 = vpop.f32.mrf.mxu1 }
 0xaf9   :  { %v1609_v58 = vpop.f32.mrf.mxu1 }
 0xafa   :  { %v1610_v20 = vadd.f32 %v1609_v58, %v1562_v1 }
 0xafb   :  { %v2551_v5 = vpop.f32.mrf.mxu1 }
 0xafc   :  { %v1675_v6 = vpack.c.bf16 %v1610_v20, %v1610_v20 }
 0xafd   :  { %v1612_v9 = vpop.f32.mrf.mxu1 }
 0xafe   :  { %v1683_v10 = vsel %vm118_vm1, %v1675_v6, 0  ;;  %v1613_v25 = vadd.f32 %v1612_v9, %v1562_v1 }
 0xaff   :  { %v2552_v14 = vpop.f32.mrf.mxu1  ;;  %2562 = vmatpush3.bf16.xpose.msra.mxu1 %v1683_v10 }
 0xb00   :  { %v1676_v17 = vpack.c.bf16 %v1613_v25, %v1613_v25  ;;  %2573 = vmatprep.subr.bf16.mxu1 %v2838_v0  ;;  %v2652_v25 = vld [vmem:[#allocation5 + $0xf0] sm:$0xff]  }
 0xb02   :  { %v1729_v19 = vsel %vm118_vm1, %v1676_v17, 0 }
 0xb03   :  { %2568 = vmatpush3.bf16.xpose.msra.mxu0 %v1729_v19 }
 0xb04   :  { %2579 = vmatprep.subr.bf16.mxu0 %v2838_v0 }
 0xb06   :  { %2564 = vmatmul.mubr.msk.bf16.vlgmr.msra.gmra.mxu1 %vm118_vm1, %v1673_v18 }
 0xb07   :  { %2575 = vmatprep.mubr.msk.bf16.mxu1 %vm2839_vm0, %v2838_v0  ;;  %2574 = vmatpush3.bf16.msra.mxu1 %v1801_v16 }
 0xb08   :  { %2585 = vmatprep.subr.bf16.mxu1 %v2838_v0 }
 0xb0a   :  { %2570 = vmatmul.mubr.msk.bf16.vlgmr.msra.gmra.mxu0 %vm118_vm1, %v1674_v13 }
 0xb0b   :  { %2581 = vmatprep.mubr.msk.bf16.mxu0 %vm2839_vm0, %v2838_v0  ;;  %2580 = vmatpush3.bf16.msra.mxu0 %v1847_v38 }
 0xb0c   :  { %2593 = vmatprep.subr.bf16.mxu0 %v2838_v0 }
 0xbc6   :  { %v1719_v40 = vpop.f32.mrf.mxu1 }
 0xbc7   :  { %v1771_v41 = vsel %vm375_vm3, %v1719_v40, -inf }
 0xbc8   :  { %1772 = vmax.xlane.f32.xlu0 %v1771_v41  ;;  %v2565_v43 = vpop.f32.mrf.mxu1 }
 0xbca   :  { %v1722_v44 = vpop.f32.mrf.mxu1  ;;  %v1765_v45 = vpop.f32.mrf.mxu0 }
 0xbcb   :  { %v1774_v46 = vsel %vm375_vm3, %v1765_v45, -inf  ;;  %v2698_v44 = vld [vmem:[#allocation2 + $0x8] sm:$0xff] }
 0xbcc   :  { %v2566_v47 = vpop.f32.mrf.mxu1  ;;  %1775 = vmax.xlane.f32.xlu1 %v1774_v46  ;;  %v2571_v48 = vpop.f32.mrf.mxu0 }
 0xbce   :  { %v1768_v23 = vpop.f32.mrf.mxu0 }
 0xbd0   :  { %v2572_v26 = vpop.f32.mrf.mxu0 }
 0xc51   :  { %v1773_v28 = vpop.xlane.xlu0 %1772 }
 0xc52   :  { %v1777_v49 = vsub.f32 %v1719_v40, %v1773_v28 }
 0xc54   :  { %v1779_v50 = vmul.f32 1.442695, %v1777_v49 }
 0xc55   :  { %v1776_v51 = vpop.xlane.xlu1 %1775 }
 0xc56   :  { %2681 = vpow2.f32 %v1779_v50  ;;  %v1778_v52 = vsub.f32 %v1765_v45, %v1776_v51  ;;  %v2653_v50 = vld [vmem:[#allocation7 + $0x8] sm:$0xff]   ;;  %v2654_v51 = vld [vmem:[#allocation7] sm:$0xff]  }
 0xc58   :  { %v1781_v53 = vmul.f32 1.442695, %v1778_v52  ;;  %v2655_v52 = vld [vmem:[#allocation7 + $0x18] sm:$0xff]  }
 0xc5a   :  { %2683 = vpow2.f32 %v1781_v53  ;;  %v2089_v53 = vsel %vm2081_vm4, %v2655_v52, 0 }
 0xc63   :  { %v2682_v54 = vpop.eup %2681 }
 0xc64   :  { %v1783_v55 = vsel %vm375_vm3, %v2682_v54, 0.0 }
 0xc65   :  { %1784 = vadd.xlane.f32.xlu0 %v1783_v55 }
 0xc67   :  { %v2684_v59 = vpop.eup %2683 }
 0xc68   :  { %v1786_v61 = vsel %vm375_vm3, %v2684_v59, 0.0 }
 0xc69   :  { %1787 = vadd.xlane.f32.xlu1 %v1786_v61 }
 0xcee   :  { %v1785_v63 = vpop.xlane.xlu0 %1784 }
 0xcef   :  { %2685 = vrcp.f32 %v1785_v63 }
 0xcf2   :  { %v1788_v1 = vpop.xlane.xlu1 %1787 }
 0xcf3   :  { %2687 = vrcp.f32 %v1788_v1 }
 0xcfc   :  { %v2686_v2 = vpop.eup %2685 }
 0xcfd   :  { %v1791_v3 = vmul.f32 %v2686_v2, %v2682_v54  ;;  %v3203_v2 = vld [vmem:[#allocation8 + $0x10] sm:$0xff] }
 0xcff   :  { %v1795_v58 = vpack.c.bf16 %v1791_v3, %v1791_v3  ;;  %v1793_v20 = vadd.f32 %v1791_v3, %v3108_v31  ;;  %v2651_v31 = vld [vmem:[#allocation5 + $0xf8] sm:$0xff]   ;;  %v2699_v3 = vld [vmem:[#allocation8 + $0x8] sm:$0xff] }
 0xd00   :  { %v2688_v4 = vpop.eup %2687 }
 0xd01   :  { %2576 = vmatmul.mubr.msk.bf16.vlgmr.msra.gmra.mxu1 %vm375_vm3, %v1795_v58  ;;  %v1792_v5 = vmul.f32 %v2688_v4, %v2684_v59  ;;  %v2174_v6 = vmul.f32 0.25, %v1793_v20  ;;  %v1986_v58 = vrot.slane %v2699_v3, %v1561_v57  ;;  %v1992_v4 = vrot.slane %v3203_v2, %v2931_v15 }
 0xd02   :  { %2589 = vmatprep.mubr.msk.bf16.mxu1 %vm2839_vm0, %v2838_v0  ;;  %2586 = vmatpush3.bf16.msra.mxu1 %v2651_v31  ;;  %v2007_v57 = vrot.slane %v2699_v3, %v575_v24 }
 0xd03   :  { %v1796_v9 = vpack.c.bf16 %v1792_v5, %v1792_v5  ;;  %v1794_v10 = vadd.f32 %v1792_v5, %v3115_v37  ;;  %2176 = vst.msk [vmem:[#allocation11] sm:$0xff] %vm375_vm3, %v2174_v6  ;;  %2587 = vmatprep.subr.bf16.mxu1 %v2838_v0 }
 0xd05   :  { %2582 = vmatmul.mubr.msk.bf16.vlgmr.msra.gmra.mxu0 %vm375_vm3, %v1796_v9  ;;  %v2175_v62 = vmul.f32 0.25, %v1794_v10 }
 0xd06   :  { %2597 = vmatprep.mubr.msk.bf16.mxu0 %vm2839_vm0, %v2838_v0  ;;  %2588 = vmatpush3.bf16.msra.mxu1 %v2652_v25 }
 0xd07   :  { %2177 = vst.msk [vmem:[#allocation11 + $0x8] sm:$0xff] %vm375_vm3, %v2175_v62  ;;  %2601 = vmatprep.subr.bf16.mxu1 %v2838_v0  ;;  %2594 = vmatpush3.bf16.msra.mxu0 %v2653_v50 }
 0xd08   :  { %2595 = vmatprep.subr.bf16.mxu0 %v2838_v0 }
 0xd0b   :  { %2596 = vmatpush3.bf16.msra.mxu0 %v2654_v51 }
 0xdc1   :  { %v1837_v14 = vpop.f32.mrf.mxu1 }
 0xdc3   :  { %v2577_v37 = vpop.f32.mrf.mxu1 }
 0xdc5   :  { %v1840_v17 = vpop.f32.mrf.mxu1  ;;  %v1883_v18 = vpop.f32.mrf.mxu0 }
 0xdc6   :  { %v1889_v19 = vpack.c.bf16 %v1883_v18, %v1837_v14  ;;  %v2656_v14 = vld [vmem:[#allocation7 + $0x10] sm:$0xff]  }
 0xdc7   :  { %v2578_v22 = vpop.f32.mrf.mxu1  ;;  %v2583_v13 = vpop.f32.mrf.mxu0  ;;  %v2086_v37 = vsel %vm2081_vm4, %v2656_v14, 0 }
 0xdc8   :  { %2590 = vmatmul.mubr.msk.bf16.vlgmr.msra.gmra.mxu1 %vm118_vm1, %v1889_v19 }
 0xdc9   :  { %v1886_v27 = vpop.f32.mrf.mxu0  ;;  %2605 = vmatprep.mubr.msk.bf16.mxu1 %vm2839_vm0, %v2838_v0  ;;  %2602 = vmatpush3.bf16.xpose.msra.mxu1 %v2089_v53 }
 0xdca   :  { %2603 = vmatprep.subr.bf16.mxu1 %v2838_v0 }
 0xdcb   :  { %v2584_v29 = vpop.f32.mrf.mxu0 }
 0xdd1   :  { %2604 = vmatpush3.bf16.xpose.msra.mxu1 %v2086_v37 }
 0xe88   :  { %v1939_v33 = vpop.f32.mrf.mxu1 }
 0xe89   :  { %v1946_v34 = vadd.f32 %v1939_v33, %v3145_v56  ;;  %v2070_v33 = vrot.slane %v2699_v3, %v1095_v60 }
 0xe8a   :  { %v2591_v36 = vpop.f32.mrf.mxu1 }
 0xe8b   :  { %v1952_v16 = vadd.f32 %v1951_v32, %v1946_v34 }
 0xe8c   :  { %v1942_v39 = vpop.f32.mrf.mxu1 }
 0xe8d   :  { %v1947_v8 = vadd.f32 %v1942_v39, %v3150_v7  ;;  %v1954_v38 = vadd.f32 %v2697_v42, %v1952_v16 }
 0xe8e   :  { %v2592_v40 = vpop.f32.mrf.mxu1 }
 0xe8f   :  { %v1953_v41 = vadd.f32 %v1951_v32, %v1947_v8  ;;  %v1956_v43 = vsel %vm118_vm1, %v1954_v38, 0.0 }
 0xe90   :  { %1957 = vadd.xlane.f32.xlu0 %v1956_v43 }
 0xe91   :  { %v1955_v45 = vadd.f32 %v2698_v44, %v1953_v41 }
 0xe93   :  { %v1959_v46 = vsel %vm118_vm1, %v1955_v45, 0.0 }
 0xe94   :  { %1960 = vadd.xlane.f32.xlu1 %v1959_v46 }
 0xf19   :  { %v1958_v12 = vpop.xlane.xlu0 %1957 }
 0xf1a   :  { %v1963_v35 = vmul.f32 0.03125, %v1958_v12 }
 0xf1c   :  { %v1965_v56 = vsub.f32 %v1954_v38, %v1963_v35 }
 0xf1d   :  { %v1961_v47 = vpop.xlane.xlu1 %1960 }
 0xf1e   :  { %v1964_v48 = vmul.f32 0.03125, %v1961_v47  ;;  %v1967_v23 = vmul.f32 %v1965_v56, %v1965_v56 }
 0xf20   :  { %v1966_v26 = vsub.f32 %v1955_v45, %v1964_v48  ;;  %v1969_v7 = vsel %vm118_vm1, %v1967_v23, 0.0 }
 0xf21   :  { %1970 = vadd.xlane.f32.xlu0 %v1969_v7 }
 0xf22   :  { %v1968_v28 = vmul.f32 %v1966_v26, %v1966_v26 }
 0xf24   :  { %v1972_v49 = vsel %vm118_vm1, %v1968_v28, 0.0 }
 0xf25   :  { %1973 = vadd.xlane.f32.xlu1 %v1972_v49 }
 0xfaa   :  { %v1971_v54 = vpop.xlane.xlu0 %1970 }
 0xfab   :  { %v1975_v55 = vmul.f32 0.03125, %v1971_v54 }
 0xfad   :  { %v1977_v59 = vadd.f32 1e-06, %v1975_v55 }
 0xfae   :  { %v1974_v61 = vpop.xlane.xlu1 %1973 }
 0xfaf   :  { %2689 = vrsqrt.f32 %v1977_v59  ;;  %v1976_v63 = vmul.f32 0.03125, %v1974_v61 }
 0xfb1   :  { %v1978_v1 = vadd.f32 1e-06, %v1976_v63 }
 0xfb3   :  { %2691 = vrsqrt.f32 %v1978_v1 }
 0xfbc   :  { %v2690_v20 = vpop.eup %2689 }
 0xfbd   :  { %v1981_v5 = vmul.f32 %v2690_v20, %v1965_v56 }
 0xfbf   :  { %v1987_v0 = vmul.f32 %v1986_v58, %v1981_v5 }
 0xfc0   :  { %v2692_v6 = vpop.eup %2691 }
 0xfc1   :  { %v1982_v9 = vmul.f32 %v2692_v6, %v1966_v26  ;;  %v1993_v10 = vadd.f32 %v1992_v4, %v1987_v0 }
 0xfc3   :  { %v1988_v62 = vmul.f32 %v1986_v58, %v1982_v9 }
 0xfc5   :  { %v1994_v31 = vadd.f32 %v1992_v4, %v1988_v62 }
 0xfc7   :  { %v2003_v25 = vpack.c.bf16 %v1994_v31, %v1993_v10 }
 0xfc9   :  { %2598 = vmatmul.mubr.msk.bf16.vlgmr.msra.gmra.mxu0 %vm118_vm1, %v2003_v25 }
0x1089   :  { %v2057_v17 = vpop.f32.mrf.mxu0 }
0x108a   :  { %v2058_v15 = vadd.f32 %v2057_v17, %v2007_v57 }
0x108b   :  { %v2599_v18 = vpop.f32.mrf.mxu0 }
0x108c   :  { %v2064_v27 = vmax.f32 %v2058_v15, 0.0 }
0x108d   :  { %v2060_v19 = vpop.f32.mrf.mxu0 }
0x108e   :  { %v2061_v22 = vadd.f32 %v2060_v19, %v2007_v57 }
0x108f   :  { %v2600_v13 = vpop.f32.mrf.mxu0 }
0x1090   :  { %v2065_v29 = vmax.f32 %v2061_v22, 0.0 }
0x1092   :  { %v2066_v32 = vpack.c.bf16 %v2065_v29, %v2064_v27 }
0x1094   :  { %2606 = vmatmul.mubr.msk.bf16.vlgmr.msra.gmra.mxu1 %vm2081_vm4, %v2066_v32 }
0x1154   :  { %v2125_v34 = vpop.f32.mrf.mxu1 }
0x1155   :  { %v2126_v36 = vadd.f32 %v2125_v34, %v2070_v33 }
0x1156   :  { %v2607_v16 = vpop.f32.mrf.mxu1 }
0x1157   :  { %v2132_v39 = vadd.f32 %v2126_v36, %v1993_v10 }
0x1158   :  { %v2128_v8 = vpop.f32.mrf.mxu1 }
0x1159   :  { %v2129_v24 = vadd.f32 %v2128_v8, %v2070_v33  ;;  %v2134_v42 = vsel %vm118_vm1, %v2132_v39, 0.0 }
0x115a   :  { %2135 = vadd.xlane.f32.xlu0 %v2134_v42  ;;  %v2608_v38 = vpop.f32.mrf.mxu1 }
0x115b   :  { %v2133_v40 = vadd.f32 %v2129_v24, %v1994_v31 }
0x115d   :  { %v2137_v41 = vsel %vm118_vm1, %v2133_v40, 0.0 }
0x115e   :  { %2138 = vadd.xlane.f32.xlu1 %v2137_v41 }
0x11e3   :  { %v2136_v43 = vpop.xlane.xlu0 %2135 }
0x11e4   :  { %v2140_v44 = vmul.f32 0.03125, %v2136_v43 }
0x11e6   :  { %v2142_v45 = vsub.f32 %v2132_v39, %v2140_v44 }
0x11e7   :  { %v2139_v46 = vpop.xlane.xlu1 %2138 }
0x11e8   :  { %v2141_v11 = vmul.f32 0.03125, %v2139_v46  ;;  %v2144_v60 = vmul.f32 %v2142_v45, %v2142_v45 }
0x11ea   :  { %v2143_v12 = vsub.f32 %v2133_v40, %v2141_v11  ;;  %v2146_v35 = vsel %vm118_vm1, %v2144_v60, 0.0 }
0x11eb   :  { %2147 = vadd.xlane.f32.xlu0 %v2146_v35 }
0x11ec   :  { %v2145_v56 = vmul.f32 %v2143_v12, %v2143_v12 }
0x11ee   :  { %v2149_v47 = vsel %vm118_vm1, %v2145_v56, 0.0 }
0x11ef   :  { %2150 = vadd.xlane.f32.xlu1 %v2149_v47 }
0x11f0   :  { %2791 = shalt.err (!%p2788_p10)
}
0x11f1   :  { %2201 = dma.vmem_to_hbm [thread:$0]  %s2196_s3, 256, %s3243_s5, [#allocation12], %s2834_s28, %s2834_s28, %s2835_s29   ;;  %v2163_v50 = vrot.slane %v3203_v2, %v3000_v30  ;;  %v2169_v53 = vrot.slane %v3203_v2, %v3084_v21 }
0x11f2   :  { %s2841_s5 = smov [#allocation10]  }
0x11f3   :  { %s2183_s18 = sshll.u32 %s2841_s5, 4  ;;  %s2184_s18 = int_to_ptr.vmem [resolvable:$true] %s2183_s18 }
0x11f4   :  { %s2800_s19 = scalar_lea.vmem %s2184_s18, 256  ;;  %p2805_p12 = scmp.lt.s32.totalorder %s2184_s18, %s2184_s18 }
0x11f5   :  { %p2801_p11 = scmp.ne.s32.totalorder %s2184_s18, %s2800_s19  ;;  %p2806_p13 = scmp.lt.s32.totalorder %s2800_s19, %s2800_s19 }
0x11f7   :  { %p2807_p0 = por %p2806_p13, %p2805_p12 }
0x11f9   :  { %p2808_p1 = pnand %p2807_p0, %p2801_p11 }
0x1274   :  { %v2148_v48 = vpop.xlane.xlu0 %2147 }
0x1275   :  { %v2152_v23 = vmul.f32 0.03125, %v2148_v48 }
0x1277   :  { %v2154_v26 = vadd.f32 1e-06, %v2152_v23 }
0x1278   :  { %v2151_v7 = vpop.xlane.xlu1 %2150 }
0x1279   :  { %2693 = vrsqrt.f32 %v2154_v26  ;;  %v2153_v28 = vmul.f32 0.03125, %v2151_v7 }
0x127b   :  { %v2155_v49 = vadd.f32 1e-06, %v2153_v28 }
0x127d   :  { %2695 = vrsqrt.f32 %v2155_v49 }
0x1286   :  { %v2694_v51 = vpop.eup %2693 }
0x1287   :  { %v2158_v52 = vmul.f32 %v2694_v51, %v2142_v45 }
0x1289   :  { %v2164_v54 = vmul.f32 %v2163_v50, %v2158_v52 }
0x128a   :  { %v2696_v55 = vpop.eup %2695 }
0x128b   :  { %v2159_v59 = vmul.f32 %v2696_v55, %v2143_v12  ;;  %v2170_v61 = vadd.f32 %v2169_v53, %v2164_v54 }
0x128d   :  { %v2165_v63 = vmul.f32 %v2163_v50, %v2159_v59  ;;  %2172 = vst.msk [vmem:[#allocation10] sm:$0xff] %vm118_vm1, %v2170_v61 }
0x128f   :  { %v2171_v1 = vadd.f32 %v2169_v53, %v2165_v63 }
0x1291   :  { %2173 = vst.msk [vmem:[#allocation10 + $0x8] sm:$0xff] %vm118_vm1, %v2171_v1 }
0x1292   :  { %2811 = shalt.err (!%p2808_p1)
}
0x1293   :  { %2189 = dma.vmem_to_hbm [thread:$0]  %s2184_s18, 256, %s3242_s4, [#allocation4], %s2834_s28, %s2834_s28, %s2835_s29  }
0x1294   :  { %2826 = dma.done.wait [#allocation4], 256  }
0x1295   :  { %2827 = vsyncadd [#allocation4], 4294967040 }
0x1296   :  { %2828 = dma.done.wait [#allocation12], 256  }
0x1297   :  { %2829 = vsyncadd [#allocation12], 4294967040 }
0x1298   :  { %2208 = vsyncpa [#allocation3], 1 }
0x1299   :  { %2209 = vsyncpa [#allocation6], 1 }
0x129a   :  { %2210 = vsyncpa [#allocation9], 1 }
0x129b   :  { %2211 = vsyncpa [#allocation4], 1 }
0x129c   :  { %2212 = vsyncpa [#allocation12], 1 }

</bundles_post_ra>
